<compile_context>
chip_gen: v5e
topology: v5e:2x2
jax: 0.10.0
libtpu: 0.0.40
codegen_flags: <defaults>
</compile_context>

<pallas_src>
import jax
import jax.numpy as jnp
from jax import lax
from jax.experimental import pallas as pl
from jax.experimental.pallas import tpu as pltpu


def lstm_net_kernel(x_ref, w_ih_ref, w_hh_ref, b_ref, w_fc_ref, b_fc_ref,
                    o_ref, gates_scr):
    """Whole LSTM recurrence + final Linear in one kernel invocation.

    x_ref    : (T*B, 1)    input sequence as a column, time-major (t*B + b)
    w_ih_ref : (1, 4H)     input->gates weight (W_ih of shape (4H,1) as row vec)
    w_hh_ref : (H, 4H)     hidden->gates weight (W_hh transposed)
    b_ref    : (1, 4H)     b_ih + b_hh
    w_fc_ref : (H, C)      final linear weight (transposed)
    b_fc_ref : (1, C)      final linear bias
    o_ref    : (B, C)      logits output
    gates_scr: (T*B, 4H)   VMEM scratch: pre-scaled input-gate term, all steps
    """
    H = w_hh_ref.shape[0]
    G = 4 * H
    B = o_ref.shape[0]
    T = x_ref.shape[0] // B

    # Lane-scale vector: 0.5 on the sigmoid lanes (i, f, o), 1.0 on the tanh
    # lanes (g).  sigma(x) = 0.5*(1 + tanh(0.5*x)), so pre-scaling the gate
    # pre-activations lets ONE full-width tanh replace 2 sigmoids + 1 tanh per
    # step.  Scaling by 0.5 is exact (power of two), so folding it into the
    # gate table and W_hh columns below is bit-equivalent.
    lane = lax.broadcasted_iota(jnp.int32, (1, G), 1)
    scale = jnp.where(jnp.logical_or(lane < 2 * H, lane >= 3 * H),
                      jnp.float32(0.5), jnp.float32(1.0))          # (1, 4H)

    # Prologue (off the serial chain): pre-scaled input-gate table for all T
    # steps:  gates_scr[t*B + b, :] = scale * (x[t,b] * W_ih + b_ih + b_hh).
    gates_scr[...] = (x_ref[...] * w_ih_ref[...] + b_ref[...]) * scale

    # Loop-invariant recurrent weight: column-scaled, bf16 for a single-pass
    # MXU matmul (f32 accumulation kept via preferred_element_type).
    w_hh_s = (w_hh_ref[...] * scale).astype(jnp.bfloat16)          # (H, 4H)

    def act(gates_scaled, c):
        # gates_scaled already carries the 0.5 factor on the sigmoid lanes.
        y = jnp.tanh(gates_scaled)                                 # one full-width EUP op
        i = 0.5 * (y[:, 0:H] + 1.0)
        f = 0.5 * (y[:, H:2 * H] + 1.0)
        g = y[:, 2 * H:3 * H]
        o = 0.5 * (y[:, 3 * H:4 * H] + 1.0)
        c_new = f * c + i * g
        h_new = o * jnp.tanh(c_new)
        return h_new, c_new

    # Peeled step t=0: h0 = c0 = 0  =>  gates are exactly the table row, no
    # recurrent matmul on the critical path for this step.
    h1, c1 = act(gates_scr[pl.ds(0, B), :], jnp.zeros((B, H), jnp.float32))

    def step(t, carry):
        h, c = carry
        off = pl.multiple_of(t * B, B)
        gates = (gates_scr[pl.ds(off, B), :]
                 + jnp.dot(h.astype(jnp.bfloat16), w_hh_s,
                           preferred_element_type=jnp.float32))    # (B, 4H)
        return act(gates, c)

    h_last, _ = lax.fori_loop(1, T, step, (h1, c1), unroll=True)

    # fc(out[:, -1, :]):  h_T @ W_fc^T + b_fc   (tiny f32 epilogue)
    o_ref[...] = (jnp.dot(h_last, w_fc_ref[...],
                          preferred_element_type=jnp.float32)
                  + b_fc_ref[...])


@jax.jit
def lstm_net_forward(x_nct, w_ih, w_hh, b, w_fc, b_fc):
    """x_nct: (B, 1, T) as in the PyTorch module.  Returns (B, num_classes)."""
    B = x_nct.shape[0]
    T = x_nct.shape[2]
    H = w_hh.shape[0]
    C = w_fc.shape[1]

    # PyTorch forward: x.transpose(1,2) -> (B, T, 1).  Reorder time-major and
    # flatten to a (T*B, 1) column so the kernel's gate table is lane-dense
    # (layout plumbing only).
    x_col = jnp.transpose(x_nct[:, 0, :], (1, 0)).reshape(T * B, 1)

    return pl.pallas_call(
        lstm_net_kernel,
        out_shape=jax.ShapeDtypeStruct((B, C), jnp.float32),
        grid_spec=pltpu.PrefetchScalarGridSpec(
            num_scalar_prefetch=0,
            grid=(1,),
            in_specs=[
                pl.BlockSpec((T * B, 1), lambda i: (0, 0)),
                pl.BlockSpec((1, 4 * H), lambda i: (0, 0)),
                pl.BlockSpec((H, 4 * H), lambda i: (0, 0)),
                pl.BlockSpec((1, 4 * H), lambda i: (0, 0)),
                pl.BlockSpec((H, C), lambda i: (0, 0)),
                pl.BlockSpec((1, C), lambda i: (0, 0)),
            ],
            out_specs=pl.BlockSpec((B, C), lambda i: (0, 0)),
            scratch_shapes=[
                pltpu.VMEM((T * B, 4 * H), jnp.float32),  # pre-scaled gates_x table
            ],
        ),
        compiler_params=pltpu.CompilerParams(
            dimension_semantics=("arbitrary",)),
    )(x_col, w_ih, w_hh, b, w_fc, b_fc)


def ref_forward(x2d, w_ih, w_hh, b, w_fc, b_fc, *, bf16_matmul=True):
    """Pure-JAX reference of the same LSTM forward (PyTorch semantics).

    x2d: (B, T) with the size-1 channel dim squeezed.  With bf16_matmul=True
    the recurrent matmul uses the same bf16-operand / f32-accumulate precision
    as the kernel; with False it is full f32 (used only as a loose sanity bound
    on bf16 quantization noise).
    """
    B, T = x2d.shape
    H = w_hh.shape[0]
    w_hh_mm = w_hh.astype(jnp.bfloat16) if bf16_matmul else w_hh
    h = jnp.zeros((B, H), jnp.float32)
    c = jnp.zeros((B, H), jnp.float32)
    for t in range(T):
        hh = jnp.dot(h.astype(w_hh_mm.dtype), w_hh_mm,
                     preferred_element_type=jnp.float32)
        gates = x2d[:, t:t + 1] * w_ih + hh + b
        i = jax.nn.sigmoid(gates[:, :H])
        f = jax.nn.sigmoid(gates[:, H:2 * H])
        g = jnp.tanh(gates[:, 2 * H:3 * H])
        o = jax.nn.sigmoid(gates[:, 3 * H:])
        c = f * c + i * g
        h = o * jnp.tanh(c)
    return h @ w_fc + b_fc


if __name__ == "__main__":
    # Small, module-consistent shapes.  B=8 fills the f32 sublane count; H=32
    # makes the gate width 4H=128 exactly one lane-dense vreg row.
    B, trace_len, hidden_size, num_classes = 8, 16, 32, 4
    H = hidden_size

    key = jax.random.PRNGKey(0)
    k_x, k_wih, k_whh, k_bih, k_bhh, k_wfc, k_bfc = jax.random.split(key, 7)

    # Deterministic synthetic parameters (PyTorch-style uniform(-1/sqrt(H), 1/sqrt(H))).
    s = 1.0 / jnp.sqrt(jnp.float32(H))
    w_ih = jax.random.uniform(k_wih, (1, 4 * H), jnp.float32, -s, s)   # W_ih (4H,1) -> row vec
    w_hh = jax.random.uniform(k_whh, (H, 4 * H), jnp.float32, -s, s)   # W_hh^T
    b = (jax.random.uniform(k_bih, (1, 4 * H), jnp.float32, -s, s)
         + jax.random.uniform(k_bhh, (1, 4 * H), jnp.float32, -s, s))  # b_ih + b_hh
    w_fc = jax.random.uniform(k_wfc, (H, num_classes), jnp.float32, -s, s)
    b_fc = jax.random.uniform(k_bfc, (1, num_classes), jnp.float32, -s, s)

    # PyTorch input: (B, 1, trace_len).
    x_nct = jax.random.normal(k_x, (B, 1, trace_len), jnp.float32)

    out = lstm_net_forward(x_nct, w_ih, w_hh, b, w_fc, b_fc)
    out = jax.block_until_ready(out)
    assert out.shape == (B, num_classes)

    # Tight check against a reference that uses the same bf16-operand matmul
    # precision as the kernel (sigma(x)=0.5*(1+tanh(x/2)) is algebraically
    # exact; only ULP-level differences remain).
    ref_bf16 = ref_forward(x_nct[:, 0, :], w_ih, w_hh, b, w_fc, b_fc,
                           bf16_matmul=True)
    assert jnp.allclose(out, ref_bf16, atol=5e-4, rtol=5e-4), (out, ref_bf16)

    # Loose sanity bound against the full-f32 reference (bf16 quantization noise).
    ref_f32 = ref_forward(x_nct[:, 0, :], w_ih, w_hh, b, w_fc, b_fc,
                          bf16_matmul=False)
    assert jnp.allclose(out, ref_f32, atol=2e-2, rtol=2e-2), (out, ref_f32)

    print("KERNEL_OK")
</pallas_src>

<mosaic_0001>
module attributes {stable_mosaic.version = 11 : i64} {
  func.func @lstm_net_kernel(%arg0: i32, %arg1: memref<128x1xf32, #tpu.memory_space<vmem>>, %arg2: memref<1x128xf32, #tpu.memory_space<vmem>>, %arg3: memref<32x128xf32, #tpu.memory_space<vmem>>, %arg4: memref<1x128xf32, #tpu.memory_space<vmem>>, %arg5: memref<32x4xf32, #tpu.memory_space<vmem>>, %arg6: memref<1x4xf32, #tpu.memory_space<vmem>>, %arg7: memref<8x4xf32, #tpu.memory_space<vmem>>, %arg8: memref<128x128xf32, #tpu.memory_space<vmem>>) attributes {dimension_semantics = [#tpu.dimension_semantics<arbitrary>], iteration_bounds = array<i64: 1>, scalar_prefetch = 0 : i64, scratch_operands = 1 : i64, tpu.core_type = #tpu.core_type<tc>, window_params = [{pipeline_mode = #tpu.pipeline_mode<synchronous>, transform_indices = @transform_0, window_bounds = array<i64: 128, 1>}, {pipeline_mode = #tpu.pipeline_mode<synchronous>, transform_indices = @transform_1, window_bounds = array<i64: 1, 128>}, {pipeline_mode = #tpu.pipeline_mode<synchronous>, transform_indices = @transform_2, window_bounds = array<i64: 32, 128>}, {pipeline_mode = #tpu.pipeline_mode<synchronous>, transform_indices = @transform_3, window_bounds = array<i64: 1, 128>}, {pipeline_mode = #tpu.pipeline_mode<synchronous>, transform_indices = @transform_4, window_bounds = array<i64: 32, 4>}, {pipeline_mode = #tpu.pipeline_mode<synchronous>, transform_indices = @transform_5, window_bounds = array<i64: 1, 4>}, {pipeline_mode = #tpu.pipeline_mode<synchronous>, transform_indices = @transform_6, window_bounds = array<i64: 8, 4>}]} {
    %0 = tpu.iota {dimensions = array<i32: 1>} : vector<1x128xi32>
    %c64_i32 = arith.constant 64 : i32
    %1 = vector.broadcast %c64_i32 : i32 to vector<1x128xi32>
    %2 = arith.cmpi slt, %0, %1 : vector<1x128xi32>
    %c96_i32 = arith.constant 96 : i32
    %3 = vector.broadcast %c96_i32 : i32 to vector<1x128xi32>
    %4 = arith.cmpi sge, %0, %3 : vector<1x128xi32>
    %5 = arith.ori %2, %4 : vector<1x128xi1>
    %cst = arith.constant 5.000000e-01 : f32
    %cst_0 = arith.constant 1.000000e+00 : f32
    %6 = vector.broadcast %cst : f32 to vector<1x128xf32>
    %7 = vector.broadcast %cst_0 : f32 to vector<1x128xf32>
    %8 = arith.select %5, %6, %7 : vector<1x128xi1>, vector<1x128xf32>
    %c0 = arith.constant 0 : index
    %c0_1 = arith.constant 0 : index
    %9 = vector.load %arg1[%c0, %c0_1] : memref<128x1xf32, #tpu.memory_space<vmem>>, vector<128x1xf32>
    %c0_2 = arith.constant 0 : index
    %c0_3 = arith.constant 0 : index
    %10 = vector.load %arg2[%c0_2, %c0_3] : memref<1x128xf32, #tpu.memory_space<vmem>>, vector<1x128xf32>
    %11 = vector.broadcast %9 : vector<128x1xf32> to vector<128x128xf32>
    %12 = vector.broadcast %10 : vector<1x128xf32> to vector<128x128xf32>
    %13 = arith.mulf %11, %12 : vector<128x128xf32>
    %c0_4 = arith.constant 0 : index
    %c0_5 = arith.constant 0 : index
    %14 = vector.load %arg4[%c0_4, %c0_5] : memref<1x128xf32, #tpu.memory_space<vmem>>, vector<1x128xf32>
    %15 = vector.broadcast %14 : vector<1x128xf32> to vector<128x128xf32>
    %16 = arith.addf %13, %15 : vector<128x128xf32>
    %17 = vector.broadcast %8 : vector<1x128xf32> to vector<128x128xf32>
    %18 = arith.mulf %16, %17 : vector<128x128xf32>
    %c0_6 = arith.constant 0 : index
    %c0_7 = arith.constant 0 : index
    %19 = vector.load %arg8[%c0_6, %c0_7] : memref<128x128xf32, #tpu.memory_space<vmem>>, vector<128x128xf32>
    tpu.vector_store %arg8[%c0_6, %c0_7], %18 {strides = array<i32>} : memref<128x128xf32, #tpu.memory_space<vmem>>, vector<128x128xf32>,
    %c0_8 = arith.constant 0 : index
    %c0_9 = arith.constant 0 : index
    %20 = vector.load %arg3[%c0_8, %c0_9] : memref<32x128xf32, #tpu.memory_space<vmem>>, vector<32x128xf32>
    %21 = vector.broadcast %8 : vector<1x128xf32> to vector<32x128xf32>
    %22 = arith.mulf %20, %21 : vector<32x128xf32>
    %23 = arith.truncf %22 : vector<32x128xf32> to vector<32x128xbf16>
    %c0_10 = arith.constant 0 : index
    %c0_11 = arith.constant 0 : index
    %24 = vector.load %arg8[%c0_10, %c0_11] : memref<128x128xf32, #tpu.memory_space<vmem>>, vector<8x128xf32>
    %cst_12 = arith.constant 0.000000e+00 : f32
    %25 = vector.broadcast %cst_12 : f32 to vector<8x32xf32>
    %26 = math.tanh %24 : vector<8x128xf32>
    %27 = vector.extract_strided_slice %26 {offsets = [0, 0], sizes = [8, 32], strides = [1, 1]} : vector<8x128xf32> to vector<8x32xf32>
    %cst_13 = arith.constant 1.000000e+00 : f32
    %28 = vector.broadcast %cst_13 : f32 to vector<8x32xf32>
    %29 = arith.addf %27, %28 : vector<8x32xf32>
    %cst_14 = arith.constant 5.000000e-01 : f32
    %30 = vector.broadcast %cst_14 : f32 to vector<8x32xf32>
    %31 = arith.mulf %30, %29 : vector<8x32xf32>
    %32 = vector.extract_strided_slice %26 {offsets = [0, 32], sizes = [8, 32], strides = [1, 1]} : vector<8x128xf32> to vector<8x32xf32>
    %cst_15 = arith.constant 1.000000e+00 : f32
    %33 = vector.broadcast %cst_15 : f32 to vector<8x32xf32>
    %34 = arith.addf %32, %33 : vector<8x32xf32>
    %cst_16 = arith.constant 5.000000e-01 : f32
    %35 = vector.broadcast %cst_16 : f32 to vector<8x32xf32>
    %36 = arith.mulf %35, %34 : vector<8x32xf32>
    %37 = vector.extract_strided_slice %26 {offsets = [0, 64], sizes = [8, 32], strides = [1, 1]} : vector<8x128xf32> to vector<8x32xf32>
    %38 = vector.extract_strided_slice %26 {offsets = [0, 96], sizes = [8, 32], strides = [1, 1]} : vector<8x128xf32> to vector<8x32xf32>
    %cst_17 = arith.constant 1.000000e+00 : f32
    %39 = vector.broadcast %cst_17 : f32 to vector<8x32xf32>
    %40 = arith.addf %38, %39 : vector<8x32xf32>
    %cst_18 = arith.constant 5.000000e-01 : f32
    %41 = vector.broadcast %cst_18 : f32 to vector<8x32xf32>
    %42 = arith.mulf %41, %40 : vector<8x32xf32>
    %43 = arith.mulf %36, %25 : vector<8x32xf32>
    %44 = arith.mulf %31, %37 : vector<8x32xf32>
    %45 = arith.addf %43, %44 : vector<8x32xf32>
    %46 = math.tanh %45 : vector<8x32xf32>
    %47 = arith.mulf %42, %46 : vector<8x32xf32>
    %c1_i32 = arith.constant 1 : i32
    %c8_i32 = arith.constant 8 : i32
    %48 = arith.muli %c1_i32, %c8_i32 : i32
    %49 = tpu.assume_multiple %48, 8 : i32
    %50 = arith.index_cast %49 : i32 to index
    %c0_19 = arith.constant 0 : index
    %51 = vector.load %arg8[%50, %c0_19] : memref<128x128xf32, #tpu.memory_space<vmem>>, vector<8x128xf32>
    %52 = arith.truncf %47 : vector<8x32xf32> to vector<8x32xbf16>
    %cst_20 = arith.constant dense<0.000000e+00> : vector<8x128xf32>
    %53 = tpu.matmul %52, %23, %cst_20 {dimension_numbers = #tpu.dot_dimension_numbers<[1], [0], [0], [1], [0, 0, 1, 1], [], []>} : vector<8x32xbf16>, vector<32x128xbf16>, vector<8x128xf32> -> vector<8x128xf32>
    %54 = arith.addf %51, %53 : vector<8x128xf32>
    %55 = math.tanh %54 : vector<8x128xf32>
    %56 = vector.extract_strided_slice %55 {offsets = [0, 0], sizes = [8, 32], strides = [1, 1]} : vector<8x128xf32> to vector<8x32xf32>
    %cst_21 = arith.constant 1.000000e+00 : f32
    %57 = vector.broadcast %cst_21 : f32 to vector<8x32xf32>
    %58 = arith.addf %56, %57 : vector<8x32xf32>
    %cst_22 = arith.constant 5.000000e-01 : f32
    %59 = vector.broadcast %cst_22 : f32 to vector<8x32xf32>
    %60 = arith.mulf %59, %58 : vector<8x32xf32>
    %61 = vector.extract_strided_slice %55 {offsets = [0, 32], sizes = [8, 32], strides = [1, 1]} : vector<8x128xf32> to vector<8x32xf32>
    %cst_23 = arith.constant 1.000000e+00 : f32
    %62 = vector.broadcast %cst_23 : f32 to vector<8x32xf32>
    %63 = arith.addf %61, %62 : vector<8x32xf32>
    %cst_24 = arith.constant 5.000000e-01 : f32
    %64 = vector.broadcast %cst_24 : f32 to vector<8x32xf32>
    %65 = arith.mulf %64, %63 : vector<8x32xf32>
    %66 = vector.extract_strided_slice %55 {offsets = [0, 64], sizes = [8, 32], strides = [1, 1]} : vector<8x128xf32> to vector<8x32xf32>
    %67 = vector.extract_strided_slice %55 {offsets = [0, 96], sizes = [8, 32], strides = [1, 1]} : vector<8x128xf32> to vector<8x32xf32>
    %cst_25 = arith.constant 1.000000e+00 : f32
    %68 = vector.broadcast %cst_25 : f32 to vector<8x32xf32>
    %69 = arith.addf %67, %68 : vector<8x32xf32>
    %cst_26 = arith.constant 5.000000e-01 : f32
    %70 = vector.broadcast %cst_26 : f32 to vector<8x32xf32>
    %71 = arith.mulf %70, %69 : vector<8x32xf32>
    %72 = arith.mulf %65, %45 : vector<8x32xf32>
    %73 = arith.mulf %60, %66 : vector<8x32xf32>
    %74 = arith.addf %72, %73 : vector<8x32xf32>
    %75 = math.tanh %74 : vector<8x32xf32>
    %76 = arith.mulf %71, %75 : vector<8x32xf32>
    %c2_i32 = arith.constant 2 : i32
    %c8_i32_27 = arith.constant 8 : i32
    %77 = arith.muli %c2_i32, %c8_i32_27 : i32
    %78 = tpu.assume_multiple %77, 8 : i32
    %79 = arith.index_cast %78 : i32 to index
    %c0_28 = arith.constant 0 : index
    %80 = vector.load %arg8[%79, %c0_28] : memref<128x128xf32, #tpu.memory_space<vmem>>, vector<8x128xf32>
    %81 = arith.truncf %76 : vector<8x32xf32> to vector<8x32xbf16>
    %cst_29 = arith.constant dense<0.000000e+00> : vector<8x128xf32>
    %82 = tpu.matmul %81, %23, %cst_29 {dimension_numbers = #tpu.dot_dimension_numbers<[1], [0], [0], [1], [0, 0, 1, 1], [], []>} : vector<8x32xbf16>, vector<32x128xbf16>, vector<8x128xf32> -> vector<8x128xf32>
    %83 = arith.addf %80, %82 : vector<8x128xf32>
    %84 = math.tanh %83 : vector<8x128xf32>
    %85 = vector.extract_strided_slice %84 {offsets = [0, 0], sizes = [8, 32], strides = [1, 1]} : vector<8x128xf32> to vector<8x32xf32>
    %cst_30 = arith.constant 1.000000e+00 : f32
    %86 = vector.broadcast %cst_30 : f32 to vector<8x32xf32>
    %87 = arith.addf %85, %86 : vector<8x32xf32>
    %cst_31 = arith.constant 5.000000e-01 : f32
    %88 = vector.broadcast %cst_31 : f32 to vector<8x32xf32>
    %89 = arith.mulf %88, %87 : vector<8x32xf32>
    %90 = vector.extract_strided_slice %84 {offsets = [0, 32], sizes = [8, 32], strides = [1, 1]} : vector<8x128xf32> to vector<8x32xf32>
    %cst_32 = arith.constant 1.000000e+00 : f32
    %91 = vector.broadcast %cst_32 : f32 to vector<8x32xf32>
    %92 = arith.addf %90, %91 : vector<8x32xf32>
    %cst_33 = arith.constant 5.000000e-01 : f32
    %93 = vector.broadcast %cst_33 : f32 to vector<8x32xf32>
    %94 = arith.mulf %93, %92 : vector<8x32xf32>
    %95 = vector.extract_strided_slice %84 {offsets = [0, 64], sizes = [8, 32], strides = [1, 1]} : vector<8x128xf32> to vector<8x32xf32>
    %96 = vector.extract_strided_slice %84 {offsets = [0, 96], sizes = [8, 32], strides = [1, 1]} : vector<8x128xf32> to vector<8x32xf32>
    %cst_34 = arith.constant 1.000000e+00 : f32
    %97 = vector.broadcast %cst_34 : f32 to vector<8x32xf32>
    %98 = arith.addf %96, %97 : vector<8x32xf32>
    %cst_35 = arith.constant 5.000000e-01 : f32
    %99 = vector.broadcast %cst_35 : f32 to vector<8x32xf32>
    %100 = arith.mulf %99, %98 : vector<8x32xf32>
    %101 = arith.mulf %94, %74 : vector<8x32xf32>
    %102 = arith.mulf %89, %95 : vector<8x32xf32>
    %103 = arith.addf %101, %102 : vector<8x32xf32>
    %104 = math.tanh %103 : vector<8x32xf32>
    %105 = arith.mulf %100, %104 : vector<8x32xf32>
    %c3_i32 = arith.constant 3 : i32
    %c8_i32_36 = arith.constant 8 : i32
    %106 = arith.muli %c3_i32, %c8_i32_36 : i32
    %107 = tpu.assume_multiple %106, 8 : i32
    %108 = arith.index_cast %107 : i32 to index
    %c0_37 = arith.constant 0 : index
    %109 = vector.load %arg8[%108, %c0_37] : memref<128x128xf32, #tpu.memory_space<vmem>>, vector<8x128xf32>
    %110 = arith.truncf %105 : vector<8x32xf32> to vector<8x32xbf16>
    %cst_38 = arith.constant dense<0.000000e+00> : vector<8x128xf32>
    %111 = tpu.matmul %110, %23, %cst_38 {dimension_numbers = #tpu.dot_dimension_numbers<[1], [0], [0], [1], [0, 0, 1, 1], [], []>} : vector<8x32xbf16>, vector<32x128xbf16>, vector<8x128xf32> -> vector<8x128xf32>
    %112 = arith.addf %109, %111 : vector<8x128xf32>
    %113 = math.tanh %112 : vector<8x128xf32>
    %114 = vector.extract_strided_slice %113 {offsets = [0, 0], sizes = [8, 32], strides = [1, 1]} : vector<8x128xf32> to vector<8x32xf32>
    %cst_39 = arith.constant 1.000000e+00 : f32
    %115 = vector.broadcast %cst_39 : f32 to vector<8x32xf32>
    %116 = arith.addf %114, %115 : vector<8x32xf32>
    %cst_40 = arith.constant 5.000000e-01 : f32
    %117 = vector.broadcast %cst_40 : f32 to vector<8x32xf32>
    %118 = arith.mulf %117, %116 : vector<8x32xf32>
    %119 = vector.extract_strided_slice %113 {offsets = [0, 32], sizes = [8, 32], strides = [1, 1]} : vector<8x128xf32> to vector<8x32xf32>
    %cst_41 = arith.constant 1.000000e+00 : f32
    %120 = vector.broadcast %cst_41 : f32 to vector<8x32xf32>
    %121 = arith.addf %119, %120 : vector<8x32xf32>
    %cst_42 = arith.constant 5.000000e-01 : f32
    %122 = vector.broadcast %cst_42 : f32 to vector<8x32xf32>
    %123 = arith.mulf %122, %121 : vector<8x32xf32>
    %124 = vector.extract_strided_slice %113 {offsets = [0, 64], sizes = [8, 32], strides = [1, 1]} : vector<8x128xf32> to vector<8x32xf32>
    %125 = vector.extract_strided_slice %113 {offsets = [0, 96], sizes = [8, 32], strides = [1, 1]} : vector<8x128xf32> to vector<8x32xf32>
    %cst_43 = arith.constant 1.000000e+00 : f32
    %126 = vector.broadcast %cst_43 : f32 to vector<8x32xf32>
    %127 = arith.addf %125, %126 : vector<8x32xf32>
    %cst_44 = arith.constant 5.000000e-01 : f32
    %128 = vector.broadcast %cst_44 : f32 to vector<8x32xf32>
    %129 = arith.mulf %128, %127 : vector<8x32xf32>
    %130 = arith.mulf %123, %103 : vector<8x32xf32>
    %131 = arith.mulf %118, %124 : vector<8x32xf32>
    %132 = arith.addf %130, %131 : vector<8x32xf32>
    %133 = math.tanh %132 : vector<8x32xf32>
    %134 = arith.mulf %129, %133 : vector<8x32xf32>
    %c4_i32 = arith.constant 4 : i32
    %c8_i32_45 = arith.constant 8 : i32
    %135 = arith.muli %c4_i32, %c8_i32_45 : i32
    %136 = tpu.assume_multiple %135, 8 : i32
    %137 = arith.index_cast %136 : i32 to index
    %c0_46 = arith.constant 0 : index
    %138 = vector.load %arg8[%137, %c0_46] : memref<128x128xf32, #tpu.memory_space<vmem>>, vector<8x128xf32>
    %139 = arith.truncf %134 : vector<8x32xf32> to vector<8x32xbf16>
    %cst_47 = arith.constant dense<0.000000e+00> : vector<8x128xf32>
    %140 = tpu.matmul %139, %23, %cst_47 {dimension_numbers = #tpu.dot_dimension_numbers<[1], [0], [0], [1], [0, 0, 1, 1], [], []>} : vector<8x32xbf16>, vector<32x128xbf16>, vector<8x128xf32> -> vector<8x128xf32>
    %141 = arith.addf %138, %140 : vector<8x128xf32>
    %142 = math.tanh %141 : vector<8x128xf32>
    %143 = vector.extract_strided_slice %142 {offsets = [0, 0], sizes = [8, 32], strides = [1, 1]} : vector<8x128xf32> to vector<8x32xf32>
    %cst_48 = arith.constant 1.000000e+00 : f32
    %144 = vector.broadcast %cst_48 : f32 to vector<8x32xf32>
    %145 = arith.addf %143, %144 : vector<8x32xf32>
    %cst_49 = arith.constant 5.000000e-01 : f32
    %146 = vector.broadcast %cst_49 : f32 to vector<8x32xf32>
    %147 = arith.mulf %146, %145 : vector<8x32xf32>
    %148 = vector.extract_strided_slice %142 {offsets = [0, 32], sizes = [8, 32], strides = [1, 1]} : vector<8x128xf32> to vector<8x32xf32>
    %cst_50 = arith.constant 1.000000e+00 : f32
    %149 = vector.broadcast %cst_50 : f32 to vector<8x32xf32>
    %150 = arith.addf %148, %149 : vector<8x32xf32>
    %cst_51 = arith.constant 5.000000e-01 : f32
    %151 = vector.broadcast %cst_51 : f32 to vector<8x32xf32>
    %152 = arith.mulf %151, %150 : vector<8x32xf32>
    %153 = vector.extract_strided_slice %142 {offsets = [0, 64], sizes = [8, 32], strides = [1, 1]} : vector<8x128xf32> to vector<8x32xf32>
    %154 = vector.extract_strided_slice %142 {offsets = [0, 96], sizes = [8, 32], strides = [1, 1]} : vector<8x128xf32> to vector<8x32xf32>
    %cst_52 = arith.constant 1.000000e+00 : f32
    %155 = vector.broadcast %cst_52 : f32 to vector<8x32xf32>
    %156 = arith.addf %154, %155 : vector<8x32xf32>
    %cst_53 = arith.constant 5.000000e-01 : f32
    %157 = vector.broadcast %cst_53 : f32 to vector<8x32xf32>
    %158 = arith.mulf %157, %156 : vector<8x32xf32>
    %159 = arith.mulf %152, %132 : vector<8x32xf32>
    %160 = arith.mulf %147, %153 : vector<8x32xf32>
    %161 = arith.addf %159, %160 : vector<8x32xf32>
    %162 = math.tanh %161 : vector<8x32xf32>
    %163 = arith.mulf %158, %162 : vector<8x32xf32>
    %c5_i32 = arith.constant 5 : i32
    %c8_i32_54 = arith.constant 8 : i32
    %164 = arith.muli %c5_i32, %c8_i32_54 : i32
    %165 = tpu.assume_multiple %164, 8 : i32
    %166 = arith.index_cast %165 : i32 to index
    %c0_55 = arith.constant 0 : index
    %167 = vector.load %arg8[%166, %c0_55] : memref<128x128xf32, #tpu.memory_space<vmem>>, vector<8x128xf32>
    %168 = arith.truncf %163 : vector<8x32xf32> to vector<8x32xbf16>
    %cst_56 = arith.constant dense<0.000000e+00> : vector<8x128xf32>
    %169 = tpu.matmul %168, %23, %cst_56 {dimension_numbers = #tpu.dot_dimension_numbers<[1], [0], [0], [1], [0, 0, 1, 1], [], []>} : vector<8x32xbf16>, vector<32x128xbf16>, vector<8x128xf32> -> vector<8x128xf32>
    %170 = arith.addf %167, %169 : vector<8x128xf32>
    %171 = math.tanh %170 : vector<8x128xf32>
    %172 = vector.extract_strided_slice %171 {offsets = [0, 0], sizes = [8, 32], strides = [1, 1]} : vector<8x128xf32> to vector<8x32xf32>
    %cst_57 = arith.constant 1.000000e+00 : f32
    %173 = vector.broadcast %cst_57 : f32 to vector<8x32xf32>
    %174 = arith.addf %172, %173 : vector<8x32xf32>
    %cst_58 = arith.constant 5.000000e-01 : f32
    %175 = vector.broadcast %cst_58 : f32 to vector<8x32xf32>
    %176 = arith.mulf %175, %174 : vector<8x32xf32>
    %177 = vector.extract_strided_slice %171 {offsets = [0, 32], sizes = [8, 32], strides = [1, 1]} : vector<8x128xf32> to vector<8x32xf32>
    %cst_59 = arith.constant 1.000000e+00 : f32
    %178 = vector.broadcast %cst_59 : f32 to vector<8x32xf32>
    %179 = arith.addf %177, %178 : vector<8x32xf32>
    %cst_60 = arith.constant 5.000000e-01 : f32
    %180 = vector.broadcast %cst_60 : f32 to vector<8x32xf32>
    %181 = arith.mulf %180, %179 : vector<8x32xf32>
    %182 = vector.extract_strided_slice %171 {offsets = [0, 64], sizes = [8, 32], strides = [1, 1]} : vector<8x128xf32> to vector<8x32xf32>
    %183 = vector.extract_strided_slice %171 {offsets = [0, 96], sizes = [8, 32], strides = [1, 1]} : vector<8x128xf32> to vector<8x32xf32>
    %cst_61 = arith.constant 1.000000e+00 : f32
    %184 = vector.broadcast %cst_61 : f32 to vector<8x32xf32>
    %185 = arith.addf %183, %184 : vector<8x32xf32>
    %cst_62 = arith.constant 5.000000e-01 : f32
    %186 = vector.broadcast %cst_62 : f32 to vector<8x32xf32>
    %187 = arith.mulf %186, %185 : vector<8x32xf32>
    %188 = arith.mulf %181, %161 : vector<8x32xf32>
    %189 = arith.mulf %176, %182 : vector<8x32xf32>
    %190 = arith.addf %188, %189 : vector<8x32xf32>
    %191 = math.tanh %190 : vector<8x32xf32>
    %192 = arith.mulf %187, %191 : vector<8x32xf32>
    %c6_i32 = arith.constant 6 : i32
    %c8_i32_63 = arith.constant 8 : i32
    %193 = arith.muli %c6_i32, %c8_i32_63 : i32
    %194 = tpu.assume_multiple %193, 8 : i32
    %195 = arith.index_cast %194 : i32 to index
    %c0_64 = arith.constant 0 : index
    %196 = vector.load %arg8[%195, %c0_64] : memref<128x128xf32, #tpu.memory_space<vmem>>, vector<8x128xf32>
    %197 = arith.truncf %192 : vector<8x32xf32> to vector<8x32xbf16>
    %cst_65 = arith.constant dense<0.000000e+00> : vector<8x128xf32>
    %198 = tpu.matmul %197, %23, %cst_65 {dimension_numbers = #tpu.dot_dimension_numbers<[1], [0], [0], [1], [0, 0, 1, 1], [], []>} : vector<8x32xbf16>, vector<32x128xbf16>, vector<8x128xf32> -> vector<8x128xf32>
    %199 = arith.addf %196, %198 : vector<8x128xf32>
    %200 = math.tanh %199 : vector<8x128xf32>
    %201 = vector.extract_strided_slice %200 {offsets = [0, 0], sizes = [8, 32], strides = [1, 1]} : vector<8x128xf32> to vector<8x32xf32>
    %cst_66 = arith.constant 1.000000e+00 : f32
    %202 = vector.broadcast %cst_66 : f32 to vector<8x32xf32>
    %203 = arith.addf %201, %202 : vector<8x32xf32>
    %cst_67 = arith.constant 5.000000e-01 : f32
    %204 = vector.broadcast %cst_67 : f32 to vector<8x32xf32>
    %205 = arith.mulf %204, %203 : vector<8x32xf32>
    %206 = vector.extract_strided_slice %200 {offsets = [0, 32], sizes = [8, 32], strides = [1, 1]} : vector<8x128xf32> to vector<8x32xf32>
    %cst_68 = arith.constant 1.000000e+00 : f32
    %207 = vector.broadcast %cst_68 : f32 to vector<8x32xf32>
    %208 = arith.addf %206, %207 : vector<8x32xf32>
    %cst_69 = arith.constant 5.000000e-01 : f32
    %209 = vector.broadcast %cst_69 : f32 to vector<8x32xf32>
    %210 = arith.mulf %209, %208 : vector<8x32xf32>
    %211 = vector.extract_strided_slice %200 {offsets = [0, 64], sizes = [8, 32], strides = [1, 1]} : vector<8x128xf32> to vector<8x32xf32>
    %212 = vector.extract_strided_slice %200 {offsets = [0, 96], sizes = [8, 32], strides = [1, 1]} : vector<8x128xf32> to vector<8x32xf32>
    %cst_70 = arith.constant 1.000000e+00 : f32
    %213 = vector.broadcast %cst_70 : f32 to vector<8x32xf32>
    %214 = arith.addf %212, %213 : vector<8x32xf32>
    %cst_71 = arith.constant 5.000000e-01 : f32
    %215 = vector.broadcast %cst_71 : f32 to vector<8x32xf32>
    %216 = arith.mulf %215, %214 : vector<8x32xf32>
    %217 = arith.mulf %210, %190 : vector<8x32xf32>
    %218 = arith.mulf %205, %211 : vector<8x32xf32>
    %219 = arith.addf %217, %218 : vector<8x32xf32>
    %220 = math.tanh %219 : vector<8x32xf32>
    %221 = arith.mulf %216, %220 : vector<8x32xf32>
    %c7_i32 = arith.constant 7 : i32
    %c8_i32_72 = arith.constant 8 : i32
    %222 = arith.muli %c7_i32, %c8_i32_72 : i32
    %223 = tpu.assume_multiple %222, 8 : i32
    %224 = arith.index_cast %223 : i32 to index
    %c0_73 = arith.constant 0 : index
    %225 = vector.load %arg8[%224, %c0_73] : memref<128x128xf32, #tpu.memory_space<vmem>>, vector<8x128xf32>
    %226 = arith.truncf %221 : vector<8x32xf32> to vector<8x32xbf16>
    %cst_74 = arith.constant dense<0.000000e+00> : vector<8x128xf32>
    %227 = tpu.matmul %226, %23, %cst_74 {dimension_numbers = #tpu.dot_dimension_numbers<[1], [0], [0], [1], [0, 0, 1, 1], [], []>} : vector<8x32xbf16>, vector<32x128xbf16>, vector<8x128xf32> -> vector<8x128xf32>
    %228 = arith.addf %225, %227 : vector<8x128xf32>
    %229 = math.tanh %228 : vector<8x128xf32>
    %230 = vector.extract_strided_slice %229 {offsets = [0, 0], sizes = [8, 32], strides = [1, 1]} : vector<8x128xf32> to vector<8x32xf32>
    %cst_75 = arith.constant 1.000000e+00 : f32
    %231 = vector.broadcast %cst_75 : f32 to vector<8x32xf32>
    %232 = arith.addf %230, %231 : vector<8x32xf32>
    %cst_76 = arith.constant 5.000000e-01 : f32
    %233 = vector.broadcast %cst_76 : f32 to vector<8x32xf32>
    %234 = arith.mulf %233, %232 : vector<8x32xf32>
    %235 = vector.extract_strided_slice %229 {offsets = [0, 32], sizes = [8, 32], strides = [1, 1]} : vector<8x128xf32> to vector<8x32xf32>
    %cst_77 = arith.constant 1.000000e+00 : f32
    %236 = vector.broadcast %cst_77 : f32 to vector<8x32xf32>
    %237 = arith.addf %235, %236 : vector<8x32xf32>
    %cst_78 = arith.constant 5.000000e-01 : f32
    %238 = vector.broadcast %cst_78 : f32 to vector<8x32xf32>
    %239 = arith.mulf %238, %237 : vector<8x32xf32>
    %240 = vector.extract_strided_slice %229 {offsets = [0, 64], sizes = [8, 32], strides = [1, 1]} : vector<8x128xf32> to vector<8x32xf32>
    %241 = vector.extract_strided_slice %229 {offsets = [0, 96], sizes = [8, 32], strides = [1, 1]} : vector<8x128xf32> to vector<8x32xf32>
    %cst_79 = arith.constant 1.000000e+00 : f32
    %242 = vector.broadcast %cst_79 : f32 to vector<8x32xf32>
    %243 = arith.addf %241, %242 : vector<8x32xf32>
    %cst_80 = arith.constant 5.000000e-01 : f32
    %244 = vector.broadcast %cst_80 : f32 to vector<8x32xf32>
    %245 = arith.mulf %244, %243 : vector<8x32xf32>
    %246 = arith.mulf %239, %219 : vector<8x32xf32>
    %247 = arith.mulf %234, %240 : vector<8x32xf32>
    %248 = arith.addf %246, %247 : vector<8x32xf32>
    %249 = math.tanh %248 : vector<8x32xf32>
    %250 = arith.mulf %245, %249 : vector<8x32xf32>
    %c8_i32_81 = arith.constant 8 : i32
    %c8_i32_82 = arith.constant 8 : i32
    %251 = arith.muli %c8_i32_81, %c8_i32_82 : i32
    %252 = tpu.assume_multiple %251, 8 : i32
    %253 = arith.index_cast %252 : i32 to index
    %c0_83 = arith.constant 0 : index
    %254 = vector.load %arg8[%253, %c0_83] : memref<128x128xf32, #tpu.memory_space<vmem>>, vector<8x128xf32>
    %255 = arith.truncf %250 : vector<8x32xf32> to vector<8x32xbf16>
    %cst_84 = arith.constant dense<0.000000e+00> : vector<8x128xf32>
    %256 = tpu.matmul %255, %23, %cst_84 {dimension_numbers = #tpu.dot_dimension_numbers<[1], [0], [0], [1], [0, 0, 1, 1], [], []>} : vector<8x32xbf16>, vector<32x128xbf16>, vector<8x128xf32> -> vector<8x128xf32>
    %257 = arith.addf %254, %256 : vector<8x128xf32>
    %258 = math.tanh %257 : vector<8x128xf32>
    %259 = vector.extract_strided_slice %258 {offsets = [0, 0], sizes = [8, 32], strides = [1, 1]} : vector<8x128xf32> to vector<8x32xf32>
    %cst_85 = arith.constant 1.000000e+00 : f32
    %260 = vector.broadcast %cst_85 : f32 to vector<8x32xf32>
    %261 = arith.addf %259, %260 : vector<8x32xf32>
    %cst_86 = arith.constant 5.000000e-01 : f32
    %262 = vector.broadcast %cst_86 : f32 to vector<8x32xf32>
    %263 = arith.mulf %262, %261 : vector<8x32xf32>
    %264 = vector.extract_strided_slice %258 {offsets = [0, 32], sizes = [8, 32], strides = [1, 1]} : vector<8x128xf32> to vector<8x32xf32>
    %cst_87 = arith.constant 1.000000e+00 : f32
    %265 = vector.broadcast %cst_87 : f32 to vector<8x32xf32>
    %266 = arith.addf %264, %265 : vector<8x32xf32>
    %cst_88 = arith.constant 5.000000e-01 : f32
    %267 = vector.broadcast %cst_88 : f32 to vector<8x32xf32>
    %268 = arith.mulf %267, %266 : vector<8x32xf32>
    %269 = vector.extract_strided_slice %258 {offsets = [0, 64], sizes = [8, 32], strides = [1, 1]} : vector<8x128xf32> to vector<8x32xf32>
    %270 = vector.extract_strided_slice %258 {offsets = [0, 96], sizes = [8, 32], strides = [1, 1]} : vector<8x128xf32> to vector<8x32xf32>
    %cst_89 = arith.constant 1.000000e+00 : f32
    %271 = vector.broadcast %cst_89 : f32 to vector<8x32xf32>
    %272 = arith.addf %270, %271 : vector<8x32xf32>
    %cst_90 = arith.constant 5.000000e-01 : f32
    %273 = vector.broadcast %cst_90 : f32 to vector<8x32xf32>
    %274 = arith.mulf %273, %272 : vector<8x32xf32>
    %275 = arith.mulf %268, %248 : vector<8x32xf32>
    %276 = arith.mulf %263, %269 : vector<8x32xf32>
    %277 = arith.addf %275, %276 : vector<8x32xf32>
    %278 = math.tanh %277 : vector<8x32xf32>
    %279 = arith.mulf %274, %278 : vector<8x32xf32>
    %c9_i32 = arith.constant 9 : i32
    %c8_i32_91 = arith.constant 8 : i32
    %280 = arith.muli %c9_i32, %c8_i32_91 : i32
    %281 = tpu.assume_multiple %280, 8 : i32
    %282 = arith.index_cast %281 : i32 to index
    %c0_92 = arith.constant 0 : index
    %283 = vector.load %arg8[%282, %c0_92] : memref<128x128xf32, #tpu.memory_space<vmem>>, vector<8x128xf32>
    %284 = arith.truncf %279 : vector<8x32xf32> to vector<8x32xbf16>
    %cst_93 = arith.constant dense<0.000000e+00> : vector<8x128xf32>
    %285 = tpu.matmul %284, %23, %cst_93 {dimension_numbers = #tpu.dot_dimension_numbers<[1], [0], [0], [1], [0, 0, 1, 1], [], []>} : vector<8x32xbf16>, vector<32x128xbf16>, vector<8x128xf32> -> vector<8x128xf32>
    %286 = arith.addf %283, %285 : vector<8x128xf32>
    %287 = math.tanh %286 : vector<8x128xf32>
    %288 = vector.extract_strided_slice %287 {offsets = [0, 0], sizes = [8, 32], strides = [1, 1]} : vector<8x128xf32> to vector<8x32xf32>
    %cst_94 = arith.constant 1.000000e+00 : f32
    %289 = vector.broadcast %cst_94 : f32 to vector<8x32xf32>
    %290 = arith.addf %288, %289 : vector<8x32xf32>
    %cst_95 = arith.constant 5.000000e-01 : f32
    %291 = vector.broadcast %cst_95 : f32 to vector<8x32xf32>
    %292 = arith.mulf %291, %290 : vector<8x32xf32>
    %293 = vector.extract_strided_slice %287 {offsets = [0, 32], sizes = [8, 32], strides = [1, 1]} : vector<8x128xf32> to vector<8x32xf32>
    %cst_96 = arith.constant 1.000000e+00 : f32
    %294 = vector.broadcast %cst_96 : f32 to vector<8x32xf32>
    %295 = arith.addf %293, %294 : vector<8x32xf32>
    %cst_97 = arith.constant 5.000000e-01 : f32
    %296 = vector.broadcast %cst_97 : f32 to vector<8x32xf32>
    %297 = arith.mulf %296, %295 : vector<8x32xf32>
    %298 = vector.extract_strided_slice %287 {offsets = [0, 64], sizes = [8, 32], strides = [1, 1]} : vector<8x128xf32> to vector<8x32xf32>
    %299 = vector.extract_strided_slice %287 {offsets = [0, 96], sizes = [8, 32], strides = [1, 1]} : vector<8x128xf32> to vector<8x32xf32>
    %cst_98 = arith.constant 1.000000e+00 : f32
    %300 = vector.broadcast %cst_98 : f32 to vector<8x32xf32>
    %301 = arith.addf %299, %300 : vector<8x32xf32>
    %cst_99 = arith.constant 5.000000e-01 : f32
    %302 = vector.broadcast %cst_99 : f32 to vector<8x32xf32>
    %303 = arith.mulf %302, %301 : vector<8x32xf32>
    %304 = arith.mulf %297, %277 : vector<8x32xf32>
    %305 = arith.mulf %292, %298 : vector<8x32xf32>
    %306 = arith.addf %304, %305 : vector<8x32xf32>
    %307 = math.tanh %306 : vector<8x32xf32>
    %308 = arith.mulf %303, %307 : vector<8x32xf32>
    %c10_i32 = arith.constant 10 : i32
    %c8_i32_100 = arith.constant 8 : i32
    %309 = arith.muli %c10_i32, %c8_i32_100 : i32
    %310 = tpu.assume_multiple %309, 8 : i32
    %311 = arith.index_cast %310 : i32 to index
    %c0_101 = arith.constant 0 : index
    %312 = vector.load %arg8[%311, %c0_101] : memref<128x128xf32, #tpu.memory_space<vmem>>, vector<8x128xf32>
    %313 = arith.truncf %308 : vector<8x32xf32> to vector<8x32xbf16>
    %cst_102 = arith.constant dense<0.000000e+00> : vector<8x128xf32>
    %314 = tpu.matmul %313, %23, %cst_102 {dimension_numbers = #tpu.dot_dimension_numbers<[1], [0], [0], [1], [0, 0, 1, 1], [], []>} : vector<8x32xbf16>, vector<32x128xbf16>, vector<8x128xf32> -> vector<8x128xf32>
    %315 = arith.addf %312, %314 : vector<8x128xf32>
    %316 = math.tanh %315 : vector<8x128xf32>
    %317 = vector.extract_strided_slice %316 {offsets = [0, 0], sizes = [8, 32], strides = [1, 1]} : vector<8x128xf32> to vector<8x32xf32>
    %cst_103 = arith.constant 1.000000e+00 : f32
    %318 = vector.broadcast %cst_103 : f32 to vector<8x32xf32>
    %319 = arith.addf %317, %318 : vector<8x32xf32>
    %cst_104 = arith.constant 5.000000e-01 : f32
    %320 = vector.broadcast %cst_104 : f32 to vector<8x32xf32>
    %321 = arith.mulf %320, %319 : vector<8x32xf32>
    %322 = vector.extract_strided_slice %316 {offsets = [0, 32], sizes = [8, 32], strides = [1, 1]} : vector<8x128xf32> to vector<8x32xf32>
    %cst_105 = arith.constant 1.000000e+00 : f32
    %323 = vector.broadcast %cst_105 : f32 to vector<8x32xf32>
    %324 = arith.addf %322, %323 : vector<8x32xf32>
    %cst_106 = arith.constant 5.000000e-01 : f32
    %325 = vector.broadcast %cst_106 : f32 to vector<8x32xf32>
    %326 = arith.mulf %325, %324 : vector<8x32xf32>
    %327 = vector.extract_strided_slice %316 {offsets = [0, 64], sizes = [8, 32], strides = [1, 1]} : vector<8x128xf32> to vector<8x32xf32>
    %328 = vector.extract_strided_slice %316 {offsets = [0, 96], sizes = [8, 32], strides = [1, 1]} : vector<8x128xf32> to vector<8x32xf32>
    %cst_107 = arith.constant 1.000000e+00 : f32
    %329 = vector.broadcast %cst_107 : f32 to vector<8x32xf32>
    %330 = arith.addf %328, %329 : vector<8x32xf32>
    %cst_108 = arith.constant 5.000000e-01 : f32
    %331 = vector.broadcast %cst_108 : f32 to vector<8x32xf32>
    %332 = arith.mulf %331, %330 : vector<8x32xf32>
    %333 = arith.mulf %326, %306 : vector<8x32xf32>
    %334 = arith.mulf %321, %327 : vector<8x32xf32>
    %335 = arith.addf %333, %334 : vector<8x32xf32>
    %336 = math.tanh %335 : vector<8x32xf32>
    %337 = arith.mulf %332, %336 : vector<8x32xf32>
    %c11_i32 = arith.constant 11 : i32
    %c8_i32_109 = arith.constant 8 : i32
    %338 = arith.muli %c11_i32, %c8_i32_109 : i32
    %339 = tpu.assume_multiple %338, 8 : i32
    %340 = arith.index_cast %339 : i32 to index
    %c0_110 = arith.constant 0 : index
    %341 = vector.load %arg8[%340, %c0_110] : memref<128x128xf32, #tpu.memory_space<vmem>>, vector<8x128xf32>
    %342 = arith.truncf %337 : vector<8x32xf32> to vector<8x32xbf16>
    %cst_111 = arith.constant dense<0.000000e+00> : vector<8x128xf32>
    %343 = tpu.matmul %342, %23, %cst_111 {dimension_numbers = #tpu.dot_dimension_numbers<[1], [0], [0], [1], [0, 0, 1, 1], [], []>} : vector<8x32xbf16>, vector<32x128xbf16>, vector<8x128xf32> -> vector<8x128xf32>
    %344 = arith.addf %341, %343 : vector<8x128xf32>
    %345 = math.tanh %344 : vector<8x128xf32>
    %346 = vector.extract_strided_slice %345 {offsets = [0, 0], sizes = [8, 32], strides = [1, 1]} : vector<8x128xf32> to vector<8x32xf32>
    %cst_112 = arith.constant 1.000000e+00 : f32
    %347 = vector.broadcast %cst_112 : f32 to vector<8x32xf32>
    %348 = arith.addf %346, %347 : vector<8x32xf32>
    %cst_113 = arith.constant 5.000000e-01 : f32
    %349 = vector.broadcast %cst_113 : f32 to vector<8x32xf32>
    %350 = arith.mulf %349, %348 : vector<8x32xf32>
    %351 = vector.extract_strided_slice %345 {offsets = [0, 32], sizes = [8, 32], strides = [1, 1]} : vector<8x128xf32> to vector<8x32xf32>
    %cst_114 = arith.constant 1.000000e+00 : f32
    %352 = vector.broadcast %cst_114 : f32 to vector<8x32xf32>
    %353 = arith.addf %351, %352 : vector<8x32xf32>
    %cst_115 = arith.constant 5.000000e-01 : f32
    %354 = vector.broadcast %cst_115 : f32 to vector<8x32xf32>
    %355 = arith.mulf %354, %353 : vector<8x32xf32>
    %356 = vector.extract_strided_slice %345 {offsets = [0, 64], sizes = [8, 32], strides = [1, 1]} : vector<8x128xf32> to vector<8x32xf32>
    %357 = vector.extract_strided_slice %345 {offsets = [0, 96], sizes = [8, 32], strides = [1, 1]} : vector<8x128xf32> to vector<8x32xf32>
    %cst_116 = arith.constant 1.000000e+00 : f32
    %358 = vector.broadcast %cst_116 : f32 to vector<8x32xf32>
    %359 = arith.addf %357, %358 : vector<8x32xf32>
    %cst_117 = arith.constant 5.000000e-01 : f32
    %360 = vector.broadcast %cst_117 : f32 to vector<8x32xf32>
    %361 = arith.mulf %360, %359 : vector<8x32xf32>
    %362 = arith.mulf %355, %335 : vector<8x32xf32>
    %363 = arith.mulf %350, %356 : vector<8x32xf32>
    %364 = arith.addf %362, %363 : vector<8x32xf32>
    %365 = math.tanh %364 : vector<8x32xf32>
    %366 = arith.mulf %361, %365 : vector<8x32xf32>
    %c12_i32 = arith.constant 12 : i32
    %c8_i32_118 = arith.constant 8 : i32
    %367 = arith.muli %c12_i32, %c8_i32_118 : i32
    %368 = tpu.assume_multiple %367, 8 : i32
    %369 = arith.index_cast %368 : i32 to index
    %c0_119 = arith.constant 0 : index
    %370 = vector.load %arg8[%369, %c0_119] : memref<128x128xf32, #tpu.memory_space<vmem>>, vector<8x128xf32>
    %371 = arith.truncf %366 : vector<8x32xf32> to vector<8x32xbf16>
    %cst_120 = arith.constant dense<0.000000e+00> : vector<8x128xf32>
    %372 = tpu.matmul %371, %23, %cst_120 {dimension_numbers = #tpu.dot_dimension_numbers<[1], [0], [0], [1], [0, 0, 1, 1], [], []>} : vector<8x32xbf16>, vector<32x128xbf16>, vector<8x128xf32> -> vector<8x128xf32>
    %373 = arith.addf %370, %372 : vector<8x128xf32>
    %374 = math.tanh %373 : vector<8x128xf32>
    %375 = vector.extract_strided_slice %374 {offsets = [0, 0], sizes = [8, 32], strides = [1, 1]} : vector<8x128xf32> to vector<8x32xf32>
    %cst_121 = arith.constant 1.000000e+00 : f32
    %376 = vector.broadcast %cst_121 : f32 to vector<8x32xf32>
    %377 = arith.addf %375, %376 : vector<8x32xf32>
    %cst_122 = arith.constant 5.000000e-01 : f32
    %378 = vector.broadcast %cst_122 : f32 to vector<8x32xf32>
    %379 = arith.mulf %378, %377 : vector<8x32xf32>
    %380 = vector.extract_strided_slice %374 {offsets = [0, 32], sizes = [8, 32], strides = [1, 1]} : vector<8x128xf32> to vector<8x32xf32>
    %cst_123 = arith.constant 1.000000e+00 : f32
    %381 = vector.broadcast %cst_123 : f32 to vector<8x32xf32>
    %382 = arith.addf %380, %381 : vector<8x32xf32>
    %cst_124 = arith.constant 5.000000e-01 : f32
    %383 = vector.broadcast %cst_124 : f32 to vector<8x32xf32>
    %384 = arith.mulf %383, %382 : vector<8x32xf32>
    %385 = vector.extract_strided_slice %374 {offsets = [0, 64], sizes = [8, 32], strides = [1, 1]} : vector<8x128xf32> to vector<8x32xf32>
    %386 = vector.extract_strided_slice %374 {offsets = [0, 96], sizes = [8, 32], strides = [1, 1]} : vector<8x128xf32> to vector<8x32xf32>
    %cst_125 = arith.constant 1.000000e+00 : f32
    %387 = vector.broadcast %cst_125 : f32 to vector<8x32xf32>
    %388 = arith.addf %386, %387 : vector<8x32xf32>
    %cst_126 = arith.constant 5.000000e-01 : f32
    %389 = vector.broadcast %cst_126 : f32 to vector<8x32xf32>
    %390 = arith.mulf %389, %388 : vector<8x32xf32>
    %391 = arith.mulf %384, %364 : vector<8x32xf32>
    %392 = arith.mulf %379, %385 : vector<8x32xf32>
    %393 = arith.addf %391, %392 : vector<8x32xf32>
    %394 = math.tanh %393 : vector<8x32xf32>
    %395 = arith.mulf %390, %394 : vector<8x32xf32>
    %c13_i32 = arith.constant 13 : i32
    %c8_i32_127 = arith.constant 8 : i32
    %396 = arith.muli %c13_i32, %c8_i32_127 : i32
    %397 = tpu.assume_multiple %396, 8 : i32
    %398 = arith.index_cast %397 : i32 to index
    %c0_128 = arith.constant 0 : index
    %399 = vector.load %arg8[%398, %c0_128] : memref<128x128xf32, #tpu.memory_space<vmem>>, vector<8x128xf32>
    %400 = arith.truncf %395 : vector<8x32xf32> to vector<8x32xbf16>
    %cst_129 = arith.constant dense<0.000000e+00> : vector<8x128xf32>
    %401 = tpu.matmul %400, %23, %cst_129 {dimension_numbers = #tpu.dot_dimension_numbers<[1], [0], [0], [1], [0, 0, 1, 1], [], []>} : vector<8x32xbf16>, vector<32x128xbf16>, vector<8x128xf32> -> vector<8x128xf32>
    %402 = arith.addf %399, %401 : vector<8x128xf32>
    %403 = math.tanh %402 : vector<8x128xf32>
    %404 = vector.extract_strided_slice %403 {offsets = [0, 0], sizes = [8, 32], strides = [1, 1]} : vector<8x128xf32> to vector<8x32xf32>
    %cst_130 = arith.constant 1.000000e+00 : f32
    %405 = vector.broadcast %cst_130 : f32 to vector<8x32xf32>
    %406 = arith.addf %404, %405 : vector<8x32xf32>
    %cst_131 = arith.constant 5.000000e-01 : f32
    %407 = vector.broadcast %cst_131 : f32 to vector<8x32xf32>
    %408 = arith.mulf %407, %406 : vector<8x32xf32>
    %409 = vector.extract_strided_slice %403 {offsets = [0, 32], sizes = [8, 32], strides = [1, 1]} : vector<8x128xf32> to vector<8x32xf32>
    %cst_132 = arith.constant 1.000000e+00 : f32
    %410 = vector.broadcast %cst_132 : f32 to vector<8x32xf32>
    %411 = arith.addf %409, %410 : vector<8x32xf32>
    %cst_133 = arith.constant 5.000000e-01 : f32
    %412 = vector.broadcast %cst_133 : f32 to vector<8x32xf32>
    %413 = arith.mulf %412, %411 : vector<8x32xf32>
    %414 = vector.extract_strided_slice %403 {offsets = [0, 64], sizes = [8, 32], strides = [1, 1]} : vector<8x128xf32> to vector<8x32xf32>
    %415 = vector.extract_strided_slice %403 {offsets = [0, 96], sizes = [8, 32], strides = [1, 1]} : vector<8x128xf32> to vector<8x32xf32>
    %cst_134 = arith.constant 1.000000e+00 : f32
    %416 = vector.broadcast %cst_134 : f32 to vector<8x32xf32>
    %417 = arith.addf %415, %416 : vector<8x32xf32>
    %cst_135 = arith.constant 5.000000e-01 : f32
    %418 = vector.broadcast %cst_135 : f32 to vector<8x32xf32>
    %419 = arith.mulf %418, %417 : vector<8x32xf32>
    %420 = arith.mulf %413, %393 : vector<8x32xf32>
    %421 = arith.mulf %408, %414 : vector<8x32xf32>
    %422 = arith.addf %420, %421 : vector<8x32xf32>
    %423 = math.tanh %422 : vector<8x32xf32>
    %424 = arith.mulf %419, %423 : vector<8x32xf32>
    %c14_i32 = arith.constant 14 : i32
    %c8_i32_136 = arith.constant 8 : i32
    %425 = arith.muli %c14_i32, %c8_i32_136 : i32
    %426 = tpu.assume_multiple %425, 8 : i32
    %427 = arith.index_cast %426 : i32 to index
    %c0_137 = arith.constant 0 : index
    %428 = vector.load %arg8[%427, %c0_137] : memref<128x128xf32, #tpu.memory_space<vmem>>, vector<8x128xf32>
    %429 = arith.truncf %424 : vector<8x32xf32> to vector<8x32xbf16>
    %cst_138 = arith.constant dense<0.000000e+00> : vector<8x128xf32>
    %430 = tpu.matmul %429, %23, %cst_138 {dimension_numbers = #tpu.dot_dimension_numbers<[1], [0], [0], [1], [0, 0, 1, 1], [], []>} : vector<8x32xbf16>, vector<32x128xbf16>, vector<8x128xf32> -> vector<8x128xf32>
    %431 = arith.addf %428, %430 : vector<8x128xf32>
    %432 = math.tanh %431 : vector<8x128xf32>
    %433 = vector.extract_strided_slice %432 {offsets = [0, 0], sizes = [8, 32], strides = [1, 1]} : vector<8x128xf32> to vector<8x32xf32>
    %cst_139 = arith.constant 1.000000e+00 : f32
    %434 = vector.broadcast %cst_139 : f32 to vector<8x32xf32>
    %435 = arith.addf %433, %434 : vector<8x32xf32>
    %cst_140 = arith.constant 5.000000e-01 : f32
    %436 = vector.broadcast %cst_140 : f32 to vector<8x32xf32>
    %437 = arith.mulf %436, %435 : vector<8x32xf32>
    %438 = vector.extract_strided_slice %432 {offsets = [0, 32], sizes = [8, 32], strides = [1, 1]} : vector<8x128xf32> to vector<8x32xf32>
    %cst_141 = arith.constant 1.000000e+00 : f32
    %439 = vector.broadcast %cst_141 : f32 to vector<8x32xf32>
    %440 = arith.addf %438, %439 : vector<8x32xf32>
    %cst_142 = arith.constant 5.000000e-01 : f32
    %441 = vector.broadcast %cst_142 : f32 to vector<8x32xf32>
    %442 = arith.mulf %441, %440 : vector<8x32xf32>
    %443 = vector.extract_strided_slice %432 {offsets = [0, 64], sizes = [8, 32], strides = [1, 1]} : vector<8x128xf32> to vector<8x32xf32>
    %444 = vector.extract_strided_slice %432 {offsets = [0, 96], sizes = [8, 32], strides = [1, 1]} : vector<8x128xf32> to vector<8x32xf32>
    %cst_143 = arith.constant 1.000000e+00 : f32
    %445 = vector.broadcast %cst_143 : f32 to vector<8x32xf32>
    %446 = arith.addf %444, %445 : vector<8x32xf32>
    %cst_144 = arith.constant 5.000000e-01 : f32
    %447 = vector.broadcast %cst_144 : f32 to vector<8x32xf32>
    %448 = arith.mulf %447, %446 : vector<8x32xf32>
    %449 = arith.mulf %442, %422 : vector<8x32xf32>
    %450 = arith.mulf %437, %443 : vector<8x32xf32>
    %451 = arith.addf %449, %450 : vector<8x32xf32>
    %452 = math.tanh %451 : vector<8x32xf32>
    %453 = arith.mulf %448, %452 : vector<8x32xf32>
    %c15_i32 = arith.constant 15 : i32
    %c8_i32_145 = arith.constant 8 : i32
    %454 = arith.muli %c15_i32, %c8_i32_145 : i32
    %455 = tpu.assume_multiple %454, 8 : i32
    %456 = arith.index_cast %455 : i32 to index
    %c0_146 = arith.constant 0 : index
    %457 = vector.load %arg8[%456, %c0_146] : memref<128x128xf32, #tpu.memory_space<vmem>>, vector<8x128xf32>
    %458 = arith.truncf %453 : vector<8x32xf32> to vector<8x32xbf16>
    %cst_147 = arith.constant dense<0.000000e+00> : vector<8x128xf32>
    %459 = tpu.matmul %458, %23, %cst_147 {dimension_numbers = #tpu.dot_dimension_numbers<[1], [0], [0], [1], [0, 0, 1, 1], [], []>} : vector<8x32xbf16>, vector<32x128xbf16>, vector<8x128xf32> -> vector<8x128xf32>
    %460 = arith.addf %457, %459 : vector<8x128xf32>
    %461 = math.tanh %460 : vector<8x128xf32>
    %462 = vector.extract_strided_slice %461 {offsets = [0, 0], sizes = [8, 32], strides = [1, 1]} : vector<8x128xf32> to vector<8x32xf32>
    %cst_148 = arith.constant 1.000000e+00 : f32
    %463 = vector.broadcast %cst_148 : f32 to vector<8x32xf32>
    %464 = arith.addf %462, %463 : vector<8x32xf32>
    %cst_149 = arith.constant 5.000000e-01 : f32
    %465 = vector.broadcast %cst_149 : f32 to vector<8x32xf32>
    %466 = arith.mulf %465, %464 : vector<8x32xf32>
    %467 = vector.extract_strided_slice %461 {offsets = [0, 32], sizes = [8, 32], strides = [1, 1]} : vector<8x128xf32> to vector<8x32xf32>
    %cst_150 = arith.constant 1.000000e+00 : f32
    %468 = vector.broadcast %cst_150 : f32 to vector<8x32xf32>
    %469 = arith.addf %467, %468 : vector<8x32xf32>
    %cst_151 = arith.constant 5.000000e-01 : f32
    %470 = vector.broadcast %cst_151 : f32 to vector<8x32xf32>
    %471 = arith.mulf %470, %469 : vector<8x32xf32>
    %472 = vector.extract_strided_slice %461 {offsets = [0, 64], sizes = [8, 32], strides = [1, 1]} : vector<8x128xf32> to vector<8x32xf32>
    %473 = vector.extract_strided_slice %461 {offsets = [0, 96], sizes = [8, 32], strides = [1, 1]} : vector<8x128xf32> to vector<8x32xf32>
    %cst_152 = arith.constant 1.000000e+00 : f32
    %474 = vector.broadcast %cst_152 : f32 to vector<8x32xf32>
    %475 = arith.addf %473, %474 : vector<8x32xf32>
    %cst_153 = arith.constant 5.000000e-01 : f32
    %476 = vector.broadcast %cst_153 : f32 to vector<8x32xf32>
    %477 = arith.mulf %476, %475 : vector<8x32xf32>
    %478 = arith.mulf %471, %451 : vector<8x32xf32>
    %479 = arith.mulf %466, %472 : vector<8x32xf32>
    %480 = arith.addf %478, %479 : vector<8x32xf32>
    %481 = math.tanh %480 : vector<8x32xf32>
    %482 = arith.mulf %477, %481 : vector<8x32xf32>
    %c15_i32_154 = arith.constant 15 : i32
    %c0_155 = arith.constant 0 : index
    %c0_156 = arith.constant 0 : index
    %483 = vector.load %arg5[%c0_155, %c0_156] : memref<32x4xf32, #tpu.memory_space<vmem>>, vector<32x4xf32>
    %cst_157 = arith.constant dense<0.000000e+00> : vector<8x4xf32>
    %484 = tpu.matmul %482, %483, %cst_157 {dimension_numbers = #tpu.dot_dimension_numbers<[1], [0], [0], [1], [0, 0, 1, 1], [], []>} : vector<8x32xf32>, vector<32x4xf32>, vector<8x4xf32> -> vector<8x4xf32>
    %c0_158 = arith.constant 0 : index
    %c0_159 = arith.constant 0 : index
    %485 = vector.load %arg6[%c0_158, %c0_159] : memref<1x4xf32, #tpu.memory_space<vmem>>, vector<1x4xf32>
    %486 = vector.broadcast %485 : vector<1x4xf32> to vector<8x4xf32>
    %487 = arith.addf %484, %486 : vector<8x4xf32>
    %c0_160 = arith.constant 0 : index
    %c0_161 = arith.constant 0 : index
    %488 = vector.load %arg7[%c0_160, %c0_161] : memref<8x4xf32, #tpu.memory_space<vmem>>, vector<8x4xf32>
    tpu.vector_store %arg7[%c0_160, %c0_161], %487 {strides = array<i32>} : memref<8x4xf32, #tpu.memory_space<vmem>>, vector<8x4xf32>,
    return
  }
  func.func @transform_0(%arg0: i32) -> (i32, i32) {
    %c0_i32 = arith.constant 0 : i32
    %c0_i32_0 = arith.constant 0 : i32
    %c0_i32_1 = arith.constant 0 : i32
    return %c0_i32, %c0_i32_0 : i32, i32
  }
  func.func @transform_1(%arg0: i32) -> (i32, i32) {
    %c0_i32 = arith.constant 0 : i32
    %c0_i32_0 = arith.constant 0 : i32
    %c0_i32_1 = arith.constant 0 : i32
    return %c0_i32, %c0_i32_0 : i32, i32
  }
  func.func @transform_2(%arg0: i32) -> (i32, i32) {
    %c0_i32 = arith.constant 0 : i32
    %c0_i32_0 = arith.constant 0 : i32
    %c0_i32_1 = arith.constant 0 : i32
    return %c0_i32, %c0_i32_0 : i32, i32
  }
  func.func @transform_3(%arg0: i32) -> (i32, i32) {
    %c0_i32 = arith.constant 0 : i32
    %c0_i32_0 = arith.constant 0 : i32
    %c0_i32_1 = arith.constant 0 : i32
    return %c0_i32, %c0_i32_0 : i32, i32
  }
  func.func @transform_4(%arg0: i32) -> (i32, i32) {
    %c0_i32 = arith.constant 0 : i32
    %c0_i32_0 = arith.constant 0 : i32
    %c0_i32_1 = arith.constant 0 : i32
    return %c0_i32, %c0_i32_0 : i32, i32
  }
  func.func @transform_5(%arg0: i32) -> (i32, i32) {
    %c0_i32 = arith.constant 0 : i32
    %c0_i32_0 = arith.constant 0 : i32
    %c0_i32_1 = arith.constant 0 : i32
    return %c0_i32, %c0_i32_0 : i32, i32
  }
  func.func @transform_6(%arg0: i32) -> (i32, i32) {
    %c0_i32 = arith.constant 0 : i32
    %c0_i32_0 = arith.constant 0 : i32
    %c0_i32_1 = arith.constant 0 : i32
    return %c0_i32, %c0_i32_0 : i32, i32
  }
}

</mosaic_0001>

<bundles_post_ra>
// kernel: lstm_net_forward.1
= control target key start
LH: loop header
LB: loop body
LE: loop exit
PB: predicated region body
PF: predicated region fallthrough
CT: control target
= control target key end

     0   :  { %v1004_v0 = vmov 0   ;;  %v24_v2 = vlaneseq  ;;  %v1005_v8 = vmov 1.0   ;;  %vm235_vm3 = vcmask 261120   ;;  %s1299_s0 = inlined_call_operand.vmem [shape: f32[128,1], index: 0, kind: input, shape index: {}]   ;;  %s1300_s1 = inlined_call_operand.vmem [shape: f32[1,128], index: 1, kind: input, shape index: {}]   ;;  %s1301_s3 = inlined_call_operand.vmem [shape: f32[1,128], index: 3, kind: input, shape index: {}]   ;;  %s1302_s2 = inlined_call_operand.vmem [shape: f32[32,128], index: 2, kind: input, shape index: {}]   ;;  %s1303_s4 = inlined_call_operand.vmem [shape: f32[32,4], index: 4, kind: input, shape index: {}]   ;;  %s1304_s5 = inlined_call_operand.vmem [shape: f32[1,4], index: 5, kind: input, shape index: {}]   ;;  %s1305_s6 = inlined_call_operand.vmem [shape: f32[8,4], index: 6, kind: output, shape index: {}]  }
   0x1   :  { %934 = vset.pattern.permute.xlu0 %v1004_v0  ;;  %v30_v1 = vld [vmem:[%s1299_s0] sm:$0xff]  ;;  %935 = vset.pattern.permute.xlu2 %v1004_v0  ;;  %v200_v21 = vld [vmem:[%s1302_s2 + $0x10] sm:$0xff]  ;;  %v201_v22 = vld [vmem:[%s1302_s2 + $0x18] sm:$0xff]  ;;  %vm908_vm4 = vcmask 31744  }
   0x2   :  { %49 = vperm.xlu0 %934, %v30_v1   ;;  %936 = vset.pattern.permute.xlu1 %v1004_v0  ;;  %v25_v3 = vand.u32 127, %v24_v2  ;;  %v1049_v4 = vld [vmem:[%s1300_s1] ss:$0 sm:$0xff]  ;;  %s1006_s1 = smov 64   ;;  %v199_v26 = vld [vmem:[%s1302_s2 + $0x8] sm:$0xff]  ;;  %v32_v55 = vld [vmem:[%s1299_s0 + $0x10] sm:$0xff] }
   0x3   :  { %v1054_v5 = vld [vmem:[%s1301_s3] ss:$0 sm:$0xff]  ;;  %s1007_s3 = smov 32   ;;  %v31_v34 = vld [vmem:[%s1299_s0 + $0x8] sm:$0xff] }
   0x4   :  { %vm26_vm0 = vcmp.lt.s32.totalorder %v25_v3, 64  ;;  %vm27_vm1 = vcmp.ge.s32.totalorder %v25_v3, 96  ;;  %v198_v23 = vld [vmem:[%s1302_s2] sm:$0xff] }
   0x5   :  { %vm28_vm2 = vmor %vm26_vm0, %vm27_vm1 }
   0x6   :  { %v1057_v9 = vsel %vm28_vm2, 0.5, %v1005_v8 }
   0x7   :  { %v204_v24 = vmul.f32 %v200_v21, %v1057_v9  ;;  %v205_v25 = vmul.f32 %v201_v22, %v1057_v9  ;;  %v202_v27 = vmul.f32 %v198_v23, %v1057_v9  ;;  %v203_v28 = vmul.f32 %v199_v26, %v1057_v9 }
   0x9   :  { %v1080_v29 = vpack.c.bf16 %v205_v25, %v204_v24  ;;  %v1083_v30 = vpack.c.bf16 %v203_v28, %v202_v27 }
   0xb   :  { %245 = vmatpush.bf16.msra.mxu0 %v1080_v29  ;;  %288 = vmatpush.bf16.msra.mxu1 %v1080_v29 }
   0xc   :  { %331 = vmatpush.bf16.msra.mxu2 %v1080_v29  ;;  %374 = vmatpush.bf16.msra.mxu3 %v1080_v29 }
   0xf   :  { %246 = vmatpush.bf16.msra.mxu0 %v1083_v30  ;;  %289 = vmatpush.bf16.msra.mxu1 %v1083_v30 }
  0x10   :  { %332 = vmatpush.bf16.msra.mxu2 %v1083_v30  ;;  %375 = vmatpush.bf16.msra.mxu3 %v1083_v30 }
  0x13   :  { %417 = vmatpush.bf16.msrb.mxu0 %v1080_v29  ;;  %460 = vmatpush.bf16.msrb.mxu1 %v1080_v29 }
  0x14   :  { %503 = vmatpush.bf16.msrb.mxu2 %v1080_v29  ;;  %546 = vmatpush.bf16.msrb.mxu3 %v1080_v29 }
  0x17   :  { %418 = vmatpush.bf16.msrb.mxu0 %v1083_v30  ;;  %461 = vmatpush.bf16.msrb.mxu1 %v1083_v30 }
  0x18   :  { %504 = vmatpush.bf16.msrb.mxu2 %v1083_v30  ;;  %547 = vmatpush.bf16.msrb.mxu3 %v1083_v30 }
  0x74   :  { %v50_v6 = vpop.permute.xlu0 %49 }
  0x75   :  { %v130_v7 = vmul.f32 %v1049_v4, %v50_v6 }
  0x77   :  { %v150_v10 = vadd.f32 %v1054_v5, %v130_v7  ;;  %v33_v7 = vld [vmem:[%s1299_s0 + $0x18] sm:$0xff] }
  0x79   :  { %v166_v11 = vmul.f32 %v150_v10, %v1057_v9 }
  0x7b   :  { %940 = vtanh.f32 %v166_v11 }
  0x81   :  { %v941_v12 = vpop.eup %940 }
  0x82   :  { %214 = vrot.lane.b32.xlu0 %v941_v12, %s1006_s1  ;;  %v210_v13 = vadd.f32 1.0, %v941_v12 }
  0x84   :  { %v211_v14 = vmul.f32 0.5, %v210_v13 }
  0x86   :  { %v212_v17 = vmul.f32 0.0, %v211_v14 }
  0xf4   :  { %v215_v15 = vpop.permute.xlu0 %214 }
  0xf5   :  { %v217_v16 = vmul.f32 %v215_v15, %v211_v14 }
  0xf7   :  { %219 = vrot.lane.b32.xlu1 %v217_v16, %s1007_s3 }
 0x169   :  { %v220_v18 = vpop.permute.xlu1 %219 }
 0x16a   :  { %v222_v19 = vadd.f32 %v220_v18, %v212_v17 }
 0x16c   :  { %942 = vtanh.f32 %v222_v19 }
 0x172   :  { %v943_v20 = vpop.eup %942 }
 0x173   :  { %225 = vrot.lane.b32.xlu1 %v943_v20, %s1006_s1 }
 0x1e5   :  { %v226_v31 = vpop.permute.xlu1 %225 }
 0x1e6   :  { %v228_v32 = vmul.f32 %v226_v31, %v211_v14  ;;  %v34_v31 = vld [vmem:[%s1299_s0 + $0x20] sm:$0xff] }
 0x1e8   :  { %v231_v33 = vpack.c.bf16 %v228_v32, %v228_v32 }
 0x1ea   :  { %233 = vrot.lane.b32.xlu2 %v231_v33, %s1007_s3 }
 0x1f2   :  { %54 = vperm.xlu2 %935, %v31_v34  }
 0x244   :  { %v234_v35 = vpop.permute.xlu2 %233 }
 0x245   :  { %914 = vmatmul.msk.bf16.vlgmr.msra.gmra.mxu0 %vm235_vm3, %v234_v35 }
 0x246   :  { %589 = vmatpush.bf16.msra.mxu0 %v1080_v29 }
 0x24a   :  { %590 = vmatpush.bf16.msra.mxu0 %v1083_v30 }
 0x24c   :  { %v55_v36 = vpop.permute.xlu2 %54 }
 0x24d   :  { %v131_v37 = vmul.f32 %v1049_v4, %v55_v36 }
 0x24f   :  { %v151_v38 = vadd.f32 %v1054_v5, %v131_v37 }
 0x251   :  { %v167_v39 = vmul.f32 %v151_v38, %v1057_v9 }
 0x2c2   :  { %v248_v40 = vpop.f32.mrf.mxu0 }
 0x2c3   :  { %v252_v41 = vadd.f32 %v248_v40, %v167_v39 }
 0x2c5   :  { %944 = vtanh.f32 %v252_v41 }
 0x2ca   :  { %v250_v42 = vpop.f32.mrf.mxu0 }
 0x2cb   :  { %v945_v43 = vpop.eup %944 }
 0x2cc   :  { %258 = vrot.lane.b32.xlu0 %v945_v43, %s1006_s1  ;;  %v254_v44 = vadd.f32 1.0, %v945_v43 }
 0x2ce   :  { %v255_v45 = vmul.f32 0.5, %v254_v44 }
 0x2d0   :  { %v256_v48 = vmul.f32 %v255_v45, %v222_v19 }
 0x33e   :  { %v259_v46 = vpop.permute.xlu0 %258 }
 0x33f   :  { %v261_v47 = vmul.f32 %v259_v46, %v255_v45 }
 0x341   :  { %263 = vrot.lane.b32.xlu1 %v261_v47, %s1007_s3 }
 0x349   :  { %59 = vperm.xlu1 %936, %v32_v55  }
 0x3b3   :  { %v264_v49 = vpop.permute.xlu1 %263 }
 0x3b4   :  { %v266_v50 = vadd.f32 %v264_v49, %v256_v48 }
 0x3b6   :  { %946 = vtanh.f32 %v266_v50 }
 0x3bb   :  { %v60_v57 = vpop.permute.xlu1 %59 }
 0x3bc   :  { %v947_v51 = vpop.eup %946  ;;  %v132_v58 = vmul.f32 %v1049_v4, %v60_v57 }
 0x3bd   :  { %269 = vrot.lane.b32.xlu2 %v947_v51, %s1006_s1 }
 0x3be   :  { %v152_v59 = vadd.f32 %v1054_v5, %v132_v58 }
 0x3c0   :  { %v168_v60 = vmul.f32 %v152_v59, %v1057_v9 }
 0x417   :  { %v270_v52 = vpop.permute.xlu2 %269 }
 0x418   :  { %v272_v53 = vmul.f32 %v270_v52, %v255_v45  ;;  %v35_v52 = vld [vmem:[%s1299_s0 + $0x28] sm:$0xff] }
 0x41a   :  { %v275_v54 = vpack.c.bf16 %v272_v53, %v272_v53 }
 0x41c   :  { %277 = vrot.lane.b32.xlu0 %v275_v54, %s1007_s3 }
 0x48e   :  { %v278_v56 = vpop.permute.xlu0 %277 }
 0x48f   :  { %915 = vmatmul.msk.bf16.vlgmr.msra.gmra.mxu1 %vm235_vm3, %v278_v56 }
 0x490   :  { %632 = vmatpush.bf16.msra.mxu1 %v1080_v29 }
 0x494   :  { %633 = vmatpush.bf16.msra.mxu1 %v1083_v30 }
 0x50c   :  { %v291_v61 = vpop.f32.mrf.mxu1 }
 0x50d   :  { %v295_v62 = vadd.f32 %v291_v61, %v168_v60 }
 0x50f   :  { %948 = vtanh.f32 %v295_v62 }
 0x514   :  { %v293_v63 = vpop.f32.mrf.mxu1 }
 0x515   :  { %v949_v0 = vpop.eup %948 }
 0x516   :  { %301 = vrot.lane.b32.xlu2 %v949_v0, %s1006_s1  ;;  %v297_v1 = vadd.f32 1.0, %v949_v0 }
 0x518   :  { %v298_v2 = vmul.f32 0.5, %v297_v1 }
 0x51a   :  { %v299_v8 = vmul.f32 %v298_v2, %v266_v50 }
 0x570   :  { %v302_v3 = vpop.permute.xlu2 %301 }
 0x571   :  { %v304_v6 = vmul.f32 %v302_v3, %v298_v2 }
 0x573   :  { %306 = vrot.lane.b32.xlu0 %v304_v6, %s1007_s3 }
 0x57b   :  { %64 = vperm.xlu0 %934, %v33_v7  }
 0x5e5   :  { %v307_v10 = vpop.permute.xlu0 %306 }
 0x5e6   :  { %v309_v11 = vadd.f32 %v307_v10, %v299_v8 }
 0x5e8   :  { %950 = vtanh.f32 %v309_v11 }
 0x5ed   :  { %v65_v17 = vpop.permute.xlu0 %64 }
 0x5ee   :  { %v951_v12 = vpop.eup %950  ;;  %v133_v18 = vmul.f32 %v1049_v4, %v65_v17 }
 0x5ef   :  { %312 = vrot.lane.b32.xlu1 %v951_v12, %s1006_s1  ;;  %v36_v12 = vld [vmem:[%s1299_s0 + $0x30] sm:$0xff] }
 0x5f0   :  { %v153_v19 = vadd.f32 %v1054_v5, %v133_v18 }
 0x5f2   :  { %v169_v20 = vmul.f32 %v153_v19, %v1057_v9 }
 0x661   :  { %v313_v13 = vpop.permute.xlu1 %312 }
 0x662   :  { %v315_v14 = vmul.f32 %v313_v13, %v298_v2 }
 0x664   :  { %v318_v15 = vpack.c.bf16 %v315_v14, %v315_v14 }
 0x666   :  { %320 = vrot.lane.b32.xlu2 %v318_v15, %s1007_s3 }
 0x6c0   :  { %v321_v16 = vpop.permute.xlu2 %320 }
 0x6c1   :  { %916 = vmatmul.msk.bf16.vlgmr.msra.gmra.mxu2 %vm235_vm3, %v321_v16 }
 0x6c2   :  { %675 = vmatpush.bf16.msra.mxu2 %v1080_v29 }
 0x6c6   :  { %676 = vmatpush.bf16.msra.mxu2 %v1083_v30 }
 0x744   :  { %v334_v21 = vpop.f32.mrf.mxu2 }
 0x745   :  { %v338_v22 = vadd.f32 %v334_v21, %v169_v20 }
 0x747   :  { %952 = vtanh.f32 %v338_v22 }
 0x74c   :  { %v336_v23 = vpop.f32.mrf.mxu2 }
 0x74d   :  { %v953_v24 = vpop.eup %952 }
 0x74e   :  { %344 = vrot.lane.b32.xlu1 %v953_v24, %s1006_s1  ;;  %v340_v25 = vadd.f32 1.0, %v953_v24 }
 0x750   :  { %v341_v26 = vmul.f32 0.5, %v340_v25 }
 0x752   :  { %v342_v32 = vmul.f32 %v341_v26, %v309_v11 }
 0x7c0   :  { %v345_v27 = vpop.permute.xlu1 %344 }
 0x7c1   :  { %v347_v28 = vmul.f32 %v345_v27, %v341_v26 }
 0x7c3   :  { %349 = vrot.lane.b32.xlu2 %v347_v28, %s1007_s3 }
 0x7cb   :  { %69 = vperm.xlu2 %935, %v34_v31  }
 0x81d   :  { %v350_v33 = vpop.permute.xlu2 %349 }
 0x81e   :  { %v352_v34 = vadd.f32 %v350_v33, %v342_v32 }
 0x820   :  { %954 = vtanh.f32 %v352_v34 }
 0x825   :  { %v70_v40 = vpop.permute.xlu2 %69 }
 0x826   :  { %v955_v35 = vpop.eup %954  ;;  %v134_v41 = vmul.f32 %v1049_v4, %v70_v40 }
 0x827   :  { %355 = vrot.lane.b32.xlu0 %v955_v35, %s1006_s1  ;;  %v37_v35 = vld [vmem:[%s1299_s0 + $0x38] sm:$0xff] }
 0x828   :  { %v154_v42 = vadd.f32 %v1054_v5, %v134_v41 }
 0x82a   :  { %v170_v43 = vmul.f32 %v154_v42, %v1057_v9 }
 0x899   :  { %v356_v36 = vpop.permute.xlu0 %355 }
 0x89a   :  { %v358_v37 = vmul.f32 %v356_v36, %v341_v26 }
 0x89c   :  { %v361_v38 = vpack.c.bf16 %v358_v37, %v358_v37 }
 0x89e   :  { %363 = vrot.lane.b32.xlu1 %v361_v38, %s1007_s3 }
 0x910   :  { %v364_v39 = vpop.permute.xlu1 %363 }
 0x911   :  { %917 = vmatmul.msk.bf16.vlgmr.msra.gmra.mxu3 %vm235_vm3, %v364_v39 }
 0x912   :  { %718 = vmatpush.bf16.msra.mxu3 %v1080_v29 }
 0x916   :  { %719 = vmatpush.bf16.msra.mxu3 %v1083_v30 }
 0x994   :  { %v377_v44 = vpop.f32.mrf.mxu3 }
 0x995   :  { %v381_v45 = vadd.f32 %v377_v44, %v170_v43 }
 0x997   :  { %956 = vtanh.f32 %v381_v45 }
 0x99c   :  { %v379_v46 = vpop.f32.mrf.mxu3 }
 0x99d   :  { %v957_v47 = vpop.eup %956 }
 0x99e   :  { %387 = vrot.lane.b32.xlu0 %v957_v47, %s1006_s1  ;;  %v383_v48 = vadd.f32 1.0, %v957_v47 }
 0x9a0   :  { %v384_v49 = vmul.f32 0.5, %v383_v48 }
 0x9a2   :  { %v385_v53 = vmul.f32 %v384_v49, %v352_v34 }
 0xa10   :  { %v388_v50 = vpop.permute.xlu0 %387 }
 0xa11   :  { %v390_v51 = vmul.f32 %v388_v50, %v384_v49 }
 0xa13   :  { %392 = vrot.lane.b32.xlu1 %v390_v51, %s1007_s3 }
 0xa1b   :  { %74 = vperm.xlu1 %936, %v35_v52  }
 0xa85   :  { %v393_v54 = vpop.permute.xlu1 %392 }
 0xa86   :  { %v395_v55 = vadd.f32 %v393_v54, %v385_v53 }
 0xa88   :  { %958 = vtanh.f32 %v395_v55 }
 0xa8d   :  { %v75_v61 = vpop.permute.xlu1 %74 }
 0xa8e   :  { %v959_v56 = vpop.eup %958  ;;  %v135_v62 = vmul.f32 %v1049_v4, %v75_v61 }
 0xa8f   :  { %398 = vrot.lane.b32.xlu2 %v959_v56, %s1006_s1 }
 0xa90   :  { %v155_v63 = vadd.f32 %v1054_v5, %v135_v62 }
 0xa92   :  { %v171_v0 = vmul.f32 %v155_v63, %v1057_v9 }
 0xae9   :  { %v399_v57 = vpop.permute.xlu2 %398 }
 0xaea   :  { %v401_v58 = vmul.f32 %v399_v57, %v384_v49 }
 0xaec   :  { %v404_v59 = vpack.c.bf16 %v401_v58, %v401_v58 }
 0xaee   :  { %406 = vrot.lane.b32.xlu0 %v404_v59, %s1007_s3 }
 0xb60   :  { %v407_v60 = vpop.permute.xlu0 %406 }
 0xb61   :  { %918 = vmatmul.msk.bf16.vlgmr.msrb.gmra.mxu0 %vm235_vm3, %v407_v60 }
 0xb62   :  { %761 = vmatpush.bf16.msrb.mxu0 %v1080_v29 }
 0xb66   :  { %762 = vmatpush.bf16.msrb.mxu0 %v1083_v30 }
 0xbde   :  { %v420_v1 = vpop.f32.mrf.mxu0 }
 0xbdf   :  { %v424_v2 = vadd.f32 %v420_v1, %v171_v0 }
 0xbe1   :  { %960 = vtanh.f32 %v424_v2 }
 0xbe6   :  { %v422_v3 = vpop.f32.mrf.mxu0 }
 0xbe7   :  { %v961_v6 = vpop.eup %960 }
 0xbe8   :  { %430 = vrot.lane.b32.xlu2 %v961_v6, %s1006_s1  ;;  %v426_v7 = vadd.f32 1.0, %v961_v6 }
 0xbea   :  { %v427_v8 = vmul.f32 0.5, %v426_v7 }
 0xbec   :  { %v428_v13 = vmul.f32 %v427_v8, %v395_v55 }
 0xc42   :  { %v431_v10 = vpop.permute.xlu2 %430 }
 0xc43   :  { %v433_v11 = vmul.f32 %v431_v10, %v427_v8 }
 0xc45   :  { %435 = vrot.lane.b32.xlu0 %v433_v11, %s1007_s3 }
 0xc4d   :  { %79 = vperm.xlu0 %934, %v36_v12  }
 0xcb7   :  { %v436_v14 = vpop.permute.xlu0 %435 }
 0xcb8   :  { %v438_v15 = vadd.f32 %v436_v14, %v428_v13  ;;  %v39_v14 = vld [vmem:[%s1299_s0 + $0x48] sm:$0xff] }
 0xcba   :  { %962 = vtanh.f32 %v438_v15 }
 0xcbf   :  { %v80_v21 = vpop.permute.xlu0 %79 }
 0xcc0   :  { %v963_v16 = vpop.eup %962  ;;  %v136_v22 = vmul.f32 %v1049_v4, %v80_v21 }
 0xcc1   :  { %441 = vrot.lane.b32.xlu1 %v963_v16, %s1006_s1 }
 0xcc2   :  { %v156_v23 = vadd.f32 %v1054_v5, %v136_v22 }
 0xcc4   :  { %v172_v24 = vmul.f32 %v156_v23, %v1057_v9 }
 0xd33   :  { %v442_v17 = vpop.permute.xlu1 %441 }
 0xd34   :  { %v444_v18 = vmul.f32 %v442_v17, %v427_v8 }
 0xd36   :  { %v447_v19 = vpack.c.bf16 %v444_v18, %v444_v18 }
 0xd38   :  { %449 = vrot.lane.b32.xlu2 %v447_v19, %s1007_s3 }
 0xd92   :  { %v450_v20 = vpop.permute.xlu2 %449 }
 0xd93   :  { %919 = vmatmul.msk.bf16.vlgmr.msrb.gmra.mxu1 %vm235_vm3, %v450_v20 }
 0xd94   :  { %804 = vmatpush.bf16.msrb.mxu1 %v1080_v29 }
 0xd98   :  { %805 = vmatpush.bf16.msrb.mxu1 %v1083_v30 }
 0xe10   :  { %v463_v25 = vpop.f32.mrf.mxu1 }
 0xe11   :  { %v467_v26 = vadd.f32 %v463_v25, %v172_v24 }
 0xe13   :  { %964 = vtanh.f32 %v467_v26 }
 0xe18   :  { %v465_v27 = vpop.f32.mrf.mxu1 }
 0xe19   :  { %v965_v28 = vpop.eup %964 }
 0xe1a   :  { %473 = vrot.lane.b32.xlu1 %v965_v28, %s1006_s1  ;;  %v469_v31 = vadd.f32 1.0, %v965_v28 }
 0xe1c   :  { %v470_v32 = vmul.f32 0.5, %v469_v31 }
 0xe1e   :  { %v471_v36 = vmul.f32 %v470_v32, %v438_v15 }
 0xe8c   :  { %v474_v33 = vpop.permute.xlu1 %473 }
 0xe8d   :  { %v476_v34 = vmul.f32 %v474_v33, %v470_v32 }
 0xe8f   :  { %478 = vrot.lane.b32.xlu2 %v476_v34, %s1007_s3 }
 0xe97   :  { %84 = vperm.xlu2 %935, %v37_v35  }
 0xee9   :  { %v479_v37 = vpop.permute.xlu2 %478 }
 0xeea   :  { %v481_v38 = vadd.f32 %v479_v37, %v471_v36  ;;  %v40_v37 = vld [vmem:[%s1299_s0 + $0x50] sm:$0xff] }
 0xeec   :  { %966 = vtanh.f32 %v481_v38 }
 0xef1   :  { %v85_v44 = vpop.permute.xlu2 %84 }
 0xef2   :  { %v967_v39 = vpop.eup %966  ;;  %v137_v45 = vmul.f32 %v1049_v4, %v85_v44 }
 0xef3   :  { %484 = vrot.lane.b32.xlu0 %v967_v39, %s1006_s1 }
 0xef4   :  { %v157_v46 = vadd.f32 %v1054_v5, %v137_v45 }
 0xef6   :  { %v173_v47 = vmul.f32 %v157_v46, %v1057_v9 }
 0xf65   :  { %v485_v40 = vpop.permute.xlu0 %484 }
 0xf66   :  { %v487_v41 = vmul.f32 %v485_v40, %v470_v32 }
 0xf68   :  { %v490_v42 = vpack.c.bf16 %v487_v41, %v487_v41 }
 0xf6a   :  { %492 = vrot.lane.b32.xlu1 %v490_v42, %s1007_s3 }
 0xfdc   :  { %v493_v43 = vpop.permute.xlu1 %492 }
 0xfdd   :  { %920 = vmatmul.msk.bf16.vlgmr.msrb.gmra.mxu2 %vm235_vm3, %v493_v43 }
 0xfde   :  { %847 = vmatpush.bf16.msrb.mxu2 %v1080_v29 }
 0xfe2   :  { %848 = vmatpush.bf16.msrb.mxu2 %v1083_v30  ;;  %v38_v30 = vld [vmem:[%s1299_s0 + $0x40] sm:$0xff] }
0x1060   :  { %v506_v48 = vpop.f32.mrf.mxu2 }
0x1061   :  { %v510_v49 = vadd.f32 %v506_v48, %v173_v47 }
0x1063   :  { %968 = vtanh.f32 %v510_v49 }
0x1068   :  { %v508_v50 = vpop.f32.mrf.mxu2 }
0x1069   :  { %v969_v51 = vpop.eup %968 }
0x106a   :  { %516 = vrot.lane.b32.xlu0 %v969_v51, %s1006_s1  ;;  %v512_v52 = vadd.f32 1.0, %v969_v51 }
0x106c   :  { %v513_v53 = vmul.f32 0.5, %v512_v52 }
0x106e   :  { %v514_v55 = vmul.f32 %v513_v53, %v481_v38 }
0x10dc   :  { %v517_v54 = vpop.permute.xlu0 %516 }
0x10dd   :  { %v519_v29 = vmul.f32 %v517_v54, %v513_v53 }
0x10df   :  { %521 = vrot.lane.b32.xlu1 %v519_v29, %s1007_s3 }
0x10e7   :  { %89 = vperm.xlu1 %936, %v38_v30  }
0x1151   :  { %v522_v56 = vpop.permute.xlu1 %521 }
0x1152   :  { %v524_v57 = vadd.f32 %v522_v56, %v514_v55  ;;  %v41_v56 = vld [vmem:[%s1299_s0 + $0x58] sm:$0xff] }
0x1154   :  { %970 = vtanh.f32 %v524_v57 }
0x1159   :  { %v90_v63 = vpop.permute.xlu1 %89 }
0x115a   :  { %v971_v58 = vpop.eup %970  ;;  %v138_v0 = vmul.f32 %v1049_v4, %v90_v63 }
0x115b   :  { %527 = vrot.lane.b32.xlu2 %v971_v58, %s1006_s1 }
0x115c   :  { %v158_v1 = vadd.f32 %v1054_v5, %v138_v0 }
0x115e   :  { %v174_v2 = vmul.f32 %v158_v1, %v1057_v9 }
0x11b5   :  { %v528_v59 = vpop.permute.xlu2 %527 }
0x11b6   :  { %v530_v60 = vmul.f32 %v528_v59, %v513_v53 }
0x11b8   :  { %v533_v61 = vpack.c.bf16 %v530_v60, %v530_v60 }
0x11ba   :  { %535 = vrot.lane.b32.xlu0 %v533_v61, %s1007_s3 }
0x122c   :  { %v536_v62 = vpop.permute.xlu0 %535 }
0x122d   :  { %921 = vmatmul.msk.bf16.vlgmr.msrb.gmra.mxu3 %vm235_vm3, %v536_v62 }
0x12b0   :  { %v549_v3 = vpop.f32.mrf.mxu3 }
0x12b1   :  { %v553_v6 = vadd.f32 %v549_v3, %v174_v2 }
0x12b3   :  { %972 = vtanh.f32 %v553_v6 }
0x12b8   :  { %v551_v7 = vpop.f32.mrf.mxu3 }
0x12b9   :  { %v973_v8 = vpop.eup %972 }
0x12ba   :  { %559 = vrot.lane.b32.xlu2 %v973_v8, %s1006_s1  ;;  %v555_v10 = vadd.f32 1.0, %v973_v8 }
0x12bc   :  { %v556_v11 = vmul.f32 0.5, %v555_v10 }
0x12be   :  { %v557_v15 = vmul.f32 %v556_v11, %v524_v57 }
0x1314   :  { %v560_v12 = vpop.permute.xlu2 %559 }
0x1315   :  { %v562_v13 = vmul.f32 %v560_v12, %v556_v11 }
0x1317   :  { %564 = vrot.lane.b32.xlu0 %v562_v13, %s1007_s3 }
0x131f   :  { %94 = vperm.xlu0 %934, %v39_v14  }
0x1389   :  { %v565_v16 = vpop.permute.xlu0 %564 }
0x138a   :  { %v567_v17 = vadd.f32 %v565_v16, %v557_v15  ;;  %v42_v16 = vld [vmem:[%s1299_s0 + $0x60] sm:$0xff] }
0x138c   :  { %974 = vtanh.f32 %v567_v17 }
0x1391   :  { %v95_v23 = vpop.permute.xlu0 %94 }
0x1392   :  { %v975_v18 = vpop.eup %974  ;;  %v139_v24 = vmul.f32 %v1049_v4, %v95_v23 }
0x1393   :  { %570 = vrot.lane.b32.xlu1 %v975_v18, %s1006_s1 }
0x1394   :  { %v159_v25 = vadd.f32 %v1054_v5, %v139_v24 }
0x1396   :  { %v175_v26 = vmul.f32 %v159_v25, %v1057_v9 }
0x1405   :  { %v571_v19 = vpop.permute.xlu1 %570 }
0x1406   :  { %v573_v20 = vmul.f32 %v571_v19, %v556_v11 }
0x1408   :  { %v576_v21 = vpack.c.bf16 %v573_v20, %v573_v20 }
0x140a   :  { %578 = vrot.lane.b32.xlu2 %v576_v21, %s1007_s3 }
0x1464   :  { %v579_v22 = vpop.permute.xlu2 %578 }
0x1465   :  { %922 = vmatmul.msk.bf16.vlgmr.msra.gmra.mxu0 %vm235_vm3, %v579_v22 }
0x14e2   :  { %v592_v27 = vpop.f32.mrf.mxu0 }
0x14e3   :  { %v596_v28 = vadd.f32 %v592_v27, %v175_v26 }
0x14e5   :  { %976 = vtanh.f32 %v596_v28 }
0x14ea   :  { %v594_v31 = vpop.f32.mrf.mxu0 }
0x14eb   :  { %v977_v32 = vpop.eup %976 }
0x14ec   :  { %602 = vrot.lane.b32.xlu1 %v977_v32, %s1006_s1  ;;  %v598_v33 = vadd.f32 1.0, %v977_v32 }
0x14ee   :  { %v599_v34 = vmul.f32 0.5, %v598_v33 }
0x14f0   :  { %v600_v38 = vmul.f32 %v599_v34, %v567_v17 }
0x155e   :  { %v603_v35 = vpop.permute.xlu1 %602 }
0x155f   :  { %v605_v36 = vmul.f32 %v603_v35, %v599_v34 }
0x1561   :  { %607 = vrot.lane.b32.xlu2 %v605_v36, %s1007_s3 }
0x1569   :  { %99 = vperm.xlu2 %935, %v40_v37  }
0x15bb   :  { %v608_v39 = vpop.permute.xlu2 %607 }
0x15bc   :  { %v610_v40 = vadd.f32 %v608_v39, %v600_v38  ;;  %v43_v39 = vld [vmem:[%s1299_s0 + $0x68] sm:$0xff] }
0x15be   :  { %978 = vtanh.f32 %v610_v40 }
0x15c3   :  { %v100_v46 = vpop.permute.xlu2 %99 }
0x15c4   :  { %v979_v41 = vpop.eup %978  ;;  %v140_v47 = vmul.f32 %v1049_v4, %v100_v46 }
0x15c5   :  { %613 = vrot.lane.b32.xlu0 %v979_v41, %s1006_s1 }
0x15c6   :  { %v160_v48 = vadd.f32 %v1054_v5, %v140_v47 }
0x15c8   :  { %v176_v49 = vmul.f32 %v160_v48, %v1057_v9 }
0x1637   :  { %v614_v42 = vpop.permute.xlu0 %613 }
0x1638   :  { %v616_v43 = vmul.f32 %v614_v42, %v599_v34 }
0x163a   :  { %v619_v44 = vpack.c.bf16 %v616_v43, %v616_v43 }
0x163c   :  { %621 = vrot.lane.b32.xlu1 %v619_v44, %s1007_s3 }
0x16ae   :  { %v622_v45 = vpop.permute.xlu1 %621 }
0x16af   :  { %923 = vmatmul.msk.bf16.vlgmr.msra.gmra.mxu1 %vm235_vm3, %v622_v45 }
0x172c   :  { %v635_v50 = vpop.f32.mrf.mxu1 }
0x172d   :  { %v639_v51 = vadd.f32 %v635_v50, %v176_v49 }
0x172f   :  { %980 = vtanh.f32 %v639_v51 }
0x1734   :  { %v637_v52 = vpop.f32.mrf.mxu1 }
0x1735   :  { %v981_v53 = vpop.eup %980 }
0x1736   :  { %645 = vrot.lane.b32.xlu0 %v981_v53, %s1006_s1  ;;  %v641_v54 = vadd.f32 1.0, %v981_v53 }
0x1738   :  { %v642_v29 = vmul.f32 0.5, %v641_v54 }
0x173a   :  { %v643_v57 = vmul.f32 %v642_v29, %v610_v40 }
0x17a8   :  { %v646_v30 = vpop.permute.xlu0 %645 }
0x17a9   :  { %v648_v55 = vmul.f32 %v646_v30, %v642_v29 }
0x17ab   :  { %650 = vrot.lane.b32.xlu1 %v648_v55, %s1007_s3 }
0x17b3   :  { %104 = vperm.xlu1 %936, %v41_v56  }
0x181d   :  { %v651_v58 = vpop.permute.xlu1 %650 }
0x181e   :  { %v653_v59 = vadd.f32 %v651_v58, %v643_v57  ;;  %v44_v58 = vld [vmem:[%s1299_s0 + $0x70] sm:$0xff] }
0x1820   :  { %982 = vtanh.f32 %v653_v59 }
0x1825   :  { %v105_v1 = vpop.permute.xlu1 %104 }
0x1826   :  { %v983_v60 = vpop.eup %982  ;;  %v141_v2 = vmul.f32 %v1049_v4, %v105_v1 }
0x1827   :  { %656 = vrot.lane.b32.xlu2 %v983_v60, %s1006_s1 }
0x1828   :  { %v161_v3 = vadd.f32 %v1054_v5, %v141_v2 }
0x182a   :  { %v177_v6 = vmul.f32 %v161_v3, %v1057_v9 }
0x1881   :  { %v657_v61 = vpop.permute.xlu2 %656 }
0x1882   :  { %v659_v62 = vmul.f32 %v657_v61, %v642_v29 }
0x1884   :  { %v662_v63 = vpack.c.bf16 %v659_v62, %v659_v62 }
0x1886   :  { %664 = vrot.lane.b32.xlu0 %v662_v63, %s1007_s3 }
0x18f8   :  { %v665_v0 = vpop.permute.xlu0 %664 }
0x18f9   :  { %924 = vmatmul.msk.bf16.vlgmr.msra.gmra.mxu2 %vm235_vm3, %v665_v0 }
0x197c   :  { %v678_v7 = vpop.f32.mrf.mxu2 }
0x197d   :  { %v682_v8 = vadd.f32 %v678_v7, %v177_v6 }
0x197f   :  { %984 = vtanh.f32 %v682_v8 }
0x1984   :  { %v680_v10 = vpop.f32.mrf.mxu2 }
0x1985   :  { %v985_v11 = vpop.eup %984 }
0x1986   :  { %688 = vrot.lane.b32.xlu2 %v985_v11, %s1006_s1  ;;  %v684_v12 = vadd.f32 1.0, %v985_v11 }
0x1988   :  { %v685_v13 = vmul.f32 0.5, %v684_v12 }
0x198a   :  { %v686_v17 = vmul.f32 %v685_v13, %v653_v59 }
0x19e0   :  { %v689_v14 = vpop.permute.xlu2 %688 }
0x19e1   :  { %v691_v15 = vmul.f32 %v689_v14, %v685_v13 }
0x19e3   :  { %693 = vrot.lane.b32.xlu0 %v691_v15, %s1007_s3 }
0x19eb   :  { %109 = vperm.xlu0 %934, %v42_v16  }
0x1a55   :  { %v694_v18 = vpop.permute.xlu0 %693 }
0x1a56   :  { %v696_v19 = vadd.f32 %v694_v18, %v686_v17  ;;  %v45_v18 = vld [vmem:[%s1299_s0 + $0x78] sm:$0xff] }
0x1a58   :  { %986 = vtanh.f32 %v696_v19 }
0x1a5d   :  { %v110_v25 = vpop.permute.xlu0 %109 }
0x1a5e   :  { %v987_v20 = vpop.eup %986  ;;  %v142_v26 = vmul.f32 %v1049_v4, %v110_v25 }
0x1a5f   :  { %699 = vrot.lane.b32.xlu1 %v987_v20, %s1006_s1 }
0x1a60   :  { %v162_v27 = vadd.f32 %v1054_v5, %v142_v26 }
0x1a62   :  { %v178_v28 = vmul.f32 %v162_v27, %v1057_v9 }
0x1ad1   :  { %v700_v21 = vpop.permute.xlu1 %699 }
0x1ad2   :  { %v702_v22 = vmul.f32 %v700_v21, %v685_v13 }
0x1ad4   :  { %v705_v23 = vpack.c.bf16 %v702_v22, %v702_v22 }
0x1ad6   :  { %707 = vrot.lane.b32.xlu2 %v705_v23, %s1007_s3 }
0x1b30   :  { %v708_v24 = vpop.permute.xlu2 %707 }
0x1b31   :  { %925 = vmatmul.msk.bf16.vlgmr.msra.gmra.mxu3 %vm235_vm3, %v708_v24 }
0x1bb4   :  { %v721_v31 = vpop.f32.mrf.mxu3 }
0x1bb5   :  { %v725_v32 = vadd.f32 %v721_v31, %v178_v28 }
0x1bb7   :  { %988 = vtanh.f32 %v725_v32 }
0x1bbc   :  { %v723_v33 = vpop.f32.mrf.mxu3 }
0x1bbd   :  { %v989_v34 = vpop.eup %988 }
0x1bbe   :  { %731 = vrot.lane.b32.xlu1 %v989_v34, %s1006_s1  ;;  %v727_v35 = vadd.f32 1.0, %v989_v34 }
0x1bc0   :  { %v728_v36 = vmul.f32 0.5, %v727_v35 }
0x1bc2   :  { %v729_v40 = vmul.f32 %v728_v36, %v696_v19 }
0x1c30   :  { %v732_v37 = vpop.permute.xlu1 %731 }
0x1c31   :  { %v734_v38 = vmul.f32 %v732_v37, %v728_v36 }
0x1c33   :  { %736 = vrot.lane.b32.xlu2 %v734_v38, %s1007_s3 }
0x1c3b   :  { %114 = vperm.xlu2 %935, %v43_v39  }
0x1c8d   :  { %v737_v41 = vpop.permute.xlu2 %736 }
0x1c8e   :  { %v739_v42 = vadd.f32 %v737_v41, %v729_v40 }
0x1c90   :  { %990 = vtanh.f32 %v739_v42 }
0x1c95   :  { %v115_v48 = vpop.permute.xlu2 %114 }
0x1c96   :  { %v991_v43 = vpop.eup %990  ;;  %v143_v49 = vmul.f32 %v1049_v4, %v115_v48 }
0x1c97   :  { %742 = vrot.lane.b32.xlu0 %v991_v43, %s1006_s1  ;;  %v877_v43 = vld [vmem:[%s1303_s4 + $0x10] sm:$0xff] }
0x1c98   :  { %v163_v50 = vadd.f32 %v1054_v5, %v143_v49  ;;  %v939_v49 = vld [vmem:[%s1304_s5] ss:$0 sm:$0xff] }
0x1c9a   :  { %v179_v51 = vmul.f32 %v163_v50, %v1057_v9 }
0x1d09   :  { %v743_v44 = vpop.permute.xlu0 %742 }
0x1d0a   :  { %v745_v45 = vmul.f32 %v743_v44, %v728_v36  ;;  %v876_v44 = vld [vmem:[%s1303_s4 + $0x8] sm:$0xff] }
0x1d0c   :  { %v748_v46 = vpack.c.bf16 %v745_v45, %v745_v45  ;;  %v875_v45 = vld [vmem:[%s1303_s4] sm:$0xff] }
0x1d0e   :  { %750 = vrot.lane.b32.xlu1 %v748_v46, %s1007_s3 }
0x1d80   :  { %v751_v47 = vpop.permute.xlu1 %750 }
0x1d81   :  { %926 = vmatmul.msk.bf16.vlgmr.msrb.gmra.mxu0 %vm235_vm3, %v751_v47 }
0x1dfe   :  { %v764_v52 = vpop.f32.mrf.mxu0 }
0x1dff   :  { %v768_v53 = vadd.f32 %v764_v52, %v179_v51 }
0x1e01   :  { %992 = vtanh.f32 %v768_v53 }
0x1e06   :  { %v766_v54 = vpop.f32.mrf.mxu0 }
0x1e07   :  { %v993_v29 = vpop.eup %992 }
0x1e08   :  { %774 = vrot.lane.b32.xlu0 %v993_v29, %s1006_s1  ;;  %v770_v30 = vadd.f32 1.0, %v993_v29 }
0x1e0a   :  { %v771_v55 = vmul.f32 0.5, %v770_v30 }
0x1e0c   :  { %v772_v59 = vmul.f32 %v771_v55, %v739_v42 }
0x1e7a   :  { %v775_v56 = vpop.permute.xlu0 %774 }
0x1e7b   :  { %v777_v57 = vmul.f32 %v775_v56, %v771_v55 }
0x1e7d   :  { %779 = vrot.lane.b32.xlu1 %v777_v57, %s1007_s3 }
0x1e85   :  { %119 = vperm.xlu1 %936, %v44_v58  }
0x1eef   :  { %v780_v60 = vpop.permute.xlu1 %779 }
0x1ef0   :  { %v782_v61 = vadd.f32 %v780_v60, %v772_v59 }
0x1ef2   :  { %994 = vtanh.f32 %v782_v61 }
0x1ef7   :  { %v120_v3 = vpop.permute.xlu1 %119 }
0x1ef8   :  { %v995_v62 = vpop.eup %994  ;;  %v144_v6 = vmul.f32 %v1049_v4, %v120_v3 }
0x1ef9   :  { %785 = vrot.lane.b32.xlu2 %v995_v62, %s1006_s1 }
0x1efa   :  { %v164_v7 = vadd.f32 %v1054_v5, %v144_v6 }
0x1efc   :  { %v180_v8 = vmul.f32 %v164_v7, %v1057_v9 }
0x1f53   :  { %v786_v63 = vpop.permute.xlu2 %785 }
0x1f54   :  { %v788_v0 = vmul.f32 %v786_v63, %v771_v55 }
0x1f56   :  { %v791_v1 = vpack.c.bf16 %v788_v0, %v788_v0 }
0x1f58   :  { %793 = vrot.lane.b32.xlu0 %v791_v1, %s1007_s3 }
0x1fca   :  { %v794_v2 = vpop.permute.xlu0 %793 }
0x1fcb   :  { %927 = vmatmul.msk.bf16.vlgmr.msrb.gmra.mxu1 %vm235_vm3, %v794_v2 }
0x2048   :  { %v807_v10 = vpop.f32.mrf.mxu1 }
0x2049   :  { %v811_v11 = vadd.f32 %v807_v10, %v180_v8 }
0x204b   :  { %996 = vtanh.f32 %v811_v11 }
0x2050   :  { %v809_v12 = vpop.f32.mrf.mxu1 }
0x2051   :  { %v997_v13 = vpop.eup %996 }
0x2052   :  { %817 = vrot.lane.b32.xlu2 %v997_v13, %s1006_s1  ;;  %v813_v14 = vadd.f32 1.0, %v997_v13 }
0x2054   :  { %v814_v15 = vmul.f32 0.5, %v813_v14 }
0x2056   :  { %v815_v19 = vmul.f32 %v814_v15, %v782_v61 }
0x20ac   :  { %v818_v16 = vpop.permute.xlu2 %817 }
0x20ad   :  { %v820_v17 = vmul.f32 %v818_v16, %v814_v15 }
0x20af   :  { %822 = vrot.lane.b32.xlu0 %v820_v17, %s1007_s3 }
0x20b7   :  { %124 = vperm.xlu0 %934, %v45_v18  }
0x2121   :  { %v823_v20 = vpop.permute.xlu0 %822 }
0x2122   :  { %v825_v21 = vadd.f32 %v823_v20, %v815_v19 }
0x2124   :  { %998 = vtanh.f32 %v825_v21 }
0x2129   :  { %v125_v27 = vpop.permute.xlu0 %124 }
0x212a   :  { %v999_v22 = vpop.eup %998  ;;  %v145_v28 = vmul.f32 %v1049_v4, %v125_v27 }
0x212b   :  { %828 = vrot.lane.b32.xlu1 %v999_v22, %s1006_s1 }
0x212c   :  { %v165_v31 = vadd.f32 %v1054_v5, %v145_v28 }
0x212e   :  { %v181_v32 = vmul.f32 %v165_v31, %v1057_v9  ;;  %v878_v9 = vld [vmem:[%s1303_s4 + $0x18] sm:$0xff] }
0x212f   :  { %900 = vmatpush.msrb.mxu3 %v878_v9 }
0x2131   :  { %901 = vmatpush.msrb.mxu3 %v877_v43 }
0x2133   :  { %902 = vmatpush.msrb.mxu3 %v876_v44 }
0x2135   :  { %903 = vmatpush.msrb.mxu3 %v875_v45 }
0x219d   :  { %v829_v23 = vpop.permute.xlu1 %828 }
0x219e   :  { %v831_v24 = vmul.f32 %v829_v23, %v814_v15 }
0x21a0   :  { %v834_v25 = vpack.c.bf16 %v831_v24, %v831_v24 }
0x21a2   :  { %836 = vrot.lane.b32.xlu2 %v834_v25, %s1007_s3 }
0x21fc   :  { %v837_v26 = vpop.permute.xlu2 %836 }
0x21fd   :  { %928 = vmatmul.msk.bf16.vlgmr.msrb.gmra.mxu2 %vm235_vm3, %v837_v26 }
0x2280   :  { %v850_v33 = vpop.f32.mrf.mxu2 }
0x2281   :  { %v854_v34 = vadd.f32 %v850_v33, %v181_v32 }
0x2283   :  { %1000 = vtanh.f32 %v854_v34 }
0x2288   :  { %v852_v35 = vpop.f32.mrf.mxu2 }
0x2289   :  { %v1001_v36 = vpop.eup %1000 }
0x228a   :  { %860 = vrot.lane.b32.xlu1 %v1001_v36, %s1006_s1  ;;  %v856_v37 = vadd.f32 1.0, %v1001_v36 }
0x228c   :  { %v857_v38 = vmul.f32 0.5, %v856_v37 }
0x228e   :  { %v858_v41 = vmul.f32 %v857_v38, %v825_v21 }
0x22fc   :  { %v861_v39 = vpop.permute.xlu1 %860 }
0x22fd   :  { %v863_v40 = vmul.f32 %v861_v39, %v857_v38 }
0x22ff   :  { %865 = vrot.lane.b32.xlu2 %v863_v40, %s1007_s3 }
0x2359   :  { %v866_v42 = vpop.permute.xlu2 %865 }
0x235a   :  { %v868_v4 = vadd.f32 %v866_v42, %v858_v41 }
0x235c   :  { %1002 = vtanh.f32 %v868_v4 }
0x2362   :  { %v1003_v5 = vpop.eup %1002 }
0x2363   :  { %871 = vrot.lane.b32.xlu0 %v1003_v5, %s1006_s1 }
0x23d5   :  { %v872_v46 = vpop.permute.xlu0 %871 }
0x23d6   :  { %v874_v47 = vmul.f32 %v872_v46, %v857_v38 }
0x23d8   :  { %884 = vrot.lane.b32.xlu1 %v874_v47, %s1007_s3 }
0x244a   :  { %v885_v48 = vpop.permute.xlu1 %884 }
0x244b   :  { %929 = vmatmul.msk.f32.vlgmr.msrb.gmra.mxu3 %vm235_vm3, %v885_v48 }
0x24ce   :  { %v905_v50 = vpop.f32.mrf.mxu3 }
0x24cf   :  { %v906_v51 = vadd.f32 %v939_v49, %v905_v50 }
0x24d1   :  { %909 = vst.msk [vmem:[%s1305_s6] sm:$0xff] %vm908_vm4, %v906_v51 }

</bundles_post_ra>
